<compile_context>
chip_gen: v5e
topology: v5e:2x2
jax: 0.10.0
libtpu: 0.0.40
codegen_flags: <defaults>
</compile_context>

<pallas_src>
import jax
import jax.numpy as jnp
from jax.experimental import pallas as pl
from jax.experimental.pallas import tpu as pltpu

# ----- small synthetic CLIP-ViT hyperparameters --------------------------------
B = 2            # batch
C = 3            # image channels
IMG = 16         # spatial size
PATCH = 8        # patch size
GRIDN = IMG // PATCH
P = GRIDN * GRIDN        # patches per image
S = P + 1                # sequence length per image (+ CLS)
S_PAD = 8                # per-image tokens padded to a full f32 sublane group
D = 32                   # transformer width
H = 4                    # attention heads
DH = D // H              # head dim
L = 2                    # transformer layers
OUT = 16                 # output embedding dim
OUT_PAD = 128            # lane-dense output slab width
PATCH_DIM = C * PATCH * PATCH


def _layernorm(x, g, b, eps=1e-5):
    mu = jnp.mean(x, axis=-1, keepdims=True)
    var = jnp.mean((x - mu) ** 2, axis=-1, keepdims=True)
    return (x - mu) * jax.lax.rsqrt(var + eps) * g + b


def clip_encode_image_kernel(
        tokens_ref, base_ref, conv_w_ref,
        ln_pre_g_ref, ln_pre_b_ref,
        ln1_g_ref, ln1_b_ref, qkv_w_ref, qkv_b_ref, ow_ref, ob_ref,
        ln2_g_ref, ln2_b_ref, fc1_w_ref, fc1_b_ref, fc2_w_ref, fc2_b_ref,
        ln_post_g_ref, ln_post_b_ref, proj_ref,
        out_ref):
    """One image per grid step. tokens_ref: (S_PAD, PATCH_DIM) bf16."""
    scale = 1.0 / float(DH) ** 0.5
    bf16 = jnp.bfloat16

    # Patch embedding (bf16 MXU operands, f32 accumulate). Token row 0 is
    # zeros, so the CLS token comes purely from `base` (cls_emb + pos[0]
    # pre-added host-side); rows >= S are sublane padding.
    x = jnp.dot(tokens_ref[...], conv_w_ref[...],
                preferred_element_type=jnp.float32) + base_ref[...]   # (S_PAD, D)
    x = _layernorm(x, ln_pre_g_ref[...], ln_pre_b_ref[...])

    # Key-validity mask built in-kernel (replaces the DMA'd dense bias).
    kpos = jax.lax.broadcasted_iota(jnp.int32, (1, S_PAD, S_PAD), 2)
    kvalid = kpos < S

    for l in range(L):
        # ---- multi-head self-attention, all heads batched ----
        h = _layernorm(x, ln1_g_ref[l], ln1_b_ref[l]).astype(bf16)
        qkv = jnp.dot(h, qkv_w_ref[l],
                      preferred_element_type=jnp.float32) + qkv_b_ref[l]
        # (S_PAD, 3D) -> head-major (3H, S_PAD, DH); single hoisted bf16 cast.
        qkv_h = pltpu.einshape(
            "shd->hsd", qkv.reshape(S_PAD, 3 * H, DH)).astype(bf16)
        q = qkv_h[0:H]
        k = qkv_h[H:2 * H]
        v = qkv_h[2 * H:3 * H]

        # Batched QK^T without materializing a transpose (contract last dims).
        s = jnp.einsum("hqd,hkd->hqk", q, k,
                       preferred_element_type=jnp.float32) * scale
        s = jnp.where(kvalid, s, -1e9)
        s = s - jnp.max(s, axis=-1, keepdims=True)
        e = jnp.exp(s)
        p = (e * pl.reciprocal(jnp.sum(e, axis=-1, keepdims=True),
                               approx=True)).astype(bf16)
        ctx = jnp.einsum("hqk,hkd->hqd", p, v,
                         preferred_element_type=jnp.float32)          # (H, S_PAD, DH)
        attn = pltpu.einshape("hsd->shd", ctx).reshape(S_PAD, D).astype(bf16)
        # One (S_PAD, D) @ (D, D) output projection for all heads.
        x = x + jnp.dot(attn, ow_ref[l],
                        preferred_element_type=jnp.float32) + ob_ref[l]

        # ---- MLP with QuickGELU (x * sigmoid(1.702 x)) ----
        h = _layernorm(x, ln2_g_ref[l], ln2_b_ref[l]).astype(bf16)
        h = jnp.dot(h, fc1_w_ref[l],
                    preferred_element_type=jnp.float32) + fc1_b_ref[l]
        h = (h * jax.nn.sigmoid(1.702 * h)).astype(bf16)
        x = x + jnp.dot(h, fc2_w_ref[l],
                        preferred_element_type=jnp.float32) + fc2_b_ref[l]

    # CLS token is row 0; project into one lane-dense (1, OUT_PAD) store.
    cls_tok = _layernorm(x[0:1, :], ln_post_g_ref[...], ln_post_b_ref[...])
    out_ref[0] = jnp.dot(cls_tok.astype(bf16), proj_ref[...],
                         preferred_element_type=jnp.float32)


def patchify(x_nchw):
    # (B, C, IMG, IMG) -> (B, P, C*ph*pw), flatten order (C, ph, pw) to match
    # PyTorch Conv2d weight layout (D, C, ph, pw).
    xb = x_nchw.reshape(B, C, GRIDN, PATCH, GRIDN, PATCH)
    xb = xb.transpose(0, 2, 4, 1, 3, 5)          # (B, gh, gw, C, ph, pw)
    return xb.reshape(B, P, PATCH_DIM)


def _full_spec(shape):
    zeros = (0,) * len(shape)
    return pl.BlockSpec(shape, lambda b, _z=zeros: _z)


def clip_encode_image(x_nchw, params):
    (conv_w, cls_emb, pos_emb, ln_pre_g, ln_pre_b,
     ln1_g, ln1_b, qkv_w, qkv_b, ow, ob,
     ln2_g, ln2_b, fc1_w, fc1_b, fc2_w, fc2_b,
     ln_post_g, ln_post_b, proj) = params
    bf16 = jnp.bfloat16

    # Per-image token layout (S_PAD sublane-padded rows):
    #   row 0         : CLS placeholder (zeros; embedding added via `base`)
    #   rows 1..P     : patches
    #   rows P+1..end : sublane padding (zeros; masked out of attention keys)
    patches = patchify(x_nchw)                                       # (B, P, PD)
    tokens = jnp.concatenate(
        [jnp.zeros((B, 1, PATCH_DIM), jnp.float32), patches,
         jnp.zeros((B, S_PAD - S, PATCH_DIM), jnp.float32)], axis=1)
    tokens = tokens.reshape(B * S_PAD, PATCH_DIM).astype(bf16)

    base = jnp.concatenate(
        [cls_emb + pos_emb[0:1], pos_emb[1:S],
         jnp.zeros((S_PAD - S, D), jnp.float32)], axis=0)            # (S_PAD, D)

    # Zero-pad the projection to a lane-dense 128-wide output slab.
    proj_pad = jnp.zeros((D, OUT_PAD), jnp.float32).at[:, :OUT].set(proj)

    cast_w = lambda w: w.astype(bf16)   # hoist bf16 weight casts out of kernel

    in_specs = [
        pl.BlockSpec((S_PAD, PATCH_DIM), lambda b: (b, 0)),   # tokens (per image)
        _full_spec((S_PAD, D)),                               # base
        _full_spec((PATCH_DIM, D)),                           # conv_w
        _full_spec((1, D)), _full_spec((1, D)),               # ln_pre g, b
        _full_spec((L, 1, D)), _full_spec((L, 1, D)),         # ln1 g, b
        _full_spec((L, D, 3 * D)), _full_spec((L, 1, 3 * D)), # qkv w, b
        _full_spec((L, D, D)), _full_spec((L, 1, D)),         # ow, ob
        _full_spec((L, 1, D)), _full_spec((L, 1, D)),         # ln2 g, b
        _full_spec((L, D, 4 * D)), _full_spec((L, 1, 4 * D)), # fc1 w, b
        _full_spec((L, 4 * D, D)), _full_spec((L, 1, D)),     # fc2 w, b
        _full_spec((1, D)), _full_spec((1, D)),               # ln_post g, b
        _full_spec((D, OUT_PAD)),                             # proj (padded)
    ]

    out = pl.pallas_call(
        clip_encode_image_kernel,
        out_shape=jax.ShapeDtypeStruct((B, 1, OUT_PAD), jnp.float32),
        grid=(B,),
        in_specs=in_specs,
        out_specs=pl.BlockSpec((1, 1, OUT_PAD), lambda b: (b, 0, 0)),
        compiler_params=pltpu.CompilerParams(
            dimension_semantics=("parallel",)),
    )(tokens, base, cast_w(conv_w),
      ln_pre_g, ln_pre_b,
      ln1_g, ln1_b, cast_w(qkv_w), qkv_b, cast_w(ow), ob,
      ln2_g, ln2_b, cast_w(fc1_w), fc1_b, cast_w(fc2_w), fc2_b,
      ln_post_g, ln_post_b, cast_w(proj_pad))

    return out.reshape(B, OUT_PAD)[:, :OUT]


def reference_encode_image(x_nchw, params):
    # Pure-JAX f32 reference with the canonical per-image / per-head math.
    (conv_w, cls_emb, pos_emb, ln_pre_g, ln_pre_b,
     ln1_g, ln1_b, qkv_w, qkv_b, ow, ob,
     ln2_g, ln2_b, fc1_w, fc1_b, fc2_w, fc2_b,
     ln_post_g, ln_post_b, proj) = params
    patches = patchify(x_nchw)
    scale = 1.0 / float(DH) ** 0.5

    def single(pp):
        x = pp @ conv_w
        x = jnp.concatenate([cls_emb, x], axis=0) + pos_emb
        x = _layernorm(x, ln_pre_g, ln_pre_b)
        for l in range(L):
            h = _layernorm(x, ln1_g[l], ln1_b[l])
            qkv = h @ qkv_w[l] + qkv_b[l]
            heads = []
            for hh in range(H):
                qh = qkv[:, hh * DH:(hh + 1) * DH]
                kh = qkv[:, D + hh * DH:D + (hh + 1) * DH]
                vh = qkv[:, 2 * D + hh * DH:2 * D + (hh + 1) * DH]
                p = jax.nn.softmax((qh @ kh.T) * scale, axis=-1)
                heads.append(p @ vh)
            attn = jnp.concatenate(heads, axis=-1)
            x = x + attn @ ow[l] + ob[l]
            h = _layernorm(x, ln2_g[l], ln2_b[l])
            h = h @ fc1_w[l] + fc1_b[l]
            h = h * jax.nn.sigmoid(1.702 * h)
            x = x + h @ fc2_w[l] + fc2_b[l]
        cls_tok = _layernorm(x[0:1, :], ln_post_g, ln_post_b)
        return (cls_tok @ proj)[0]

    return jax.vmap(single)(patches)


def init_params(key):
    ks = jax.random.split(key, 12)

    def normal(k, shape, std=0.02):
        return (std * jax.random.normal(k, shape)).astype(jnp.float32)

    ones = lambda shape: jnp.ones(shape, jnp.float32)
    zeros = lambda shape: jnp.zeros(shape, jnp.float32)

    conv_w = normal(ks[0], (PATCH_DIM, D))
    cls_emb = normal(ks[1], (1, D))
    pos_emb = normal(ks[2], (S, D))
    ln_pre_g, ln_pre_b = ones((1, D)), zeros((1, D))
    ln1_g, ln1_b = ones((L, 1, D)), zeros((L, 1, D))
    qkv_w = normal(ks[3], (L, D, 3 * D))
    qkv_b = normal(ks[4], (L, 1, 3 * D))
    ow = normal(ks[5], (L, D, D))
    ob = normal(ks[6], (L, 1, D))
    ln2_g, ln2_b = ones((L, 1, D)), zeros((L, 1, D))
    fc1_w = normal(ks[7], (L, D, 4 * D))
    fc1_b = normal(ks[8], (L, 1, 4 * D))
    fc2_w = normal(ks[9], (L, 4 * D, D))
    fc2_b = normal(ks[10], (L, 1, D))
    ln_post_g, ln_post_b = ones((1, D)), zeros((1, D))
    proj = normal(ks[11], (D, OUT), std=0.1)

    return (conv_w, cls_emb, pos_emb, ln_pre_g, ln_pre_b,
            ln1_g, ln1_b, qkv_w, qkv_b, ow, ob,
            ln2_g, ln2_b, fc1_w, fc1_b, fc2_w, fc2_b,
            ln_post_g, ln_post_b, proj)


if __name__ == "__main__":
    root = jax.random.PRNGKey(0)
    kx, kp = jax.random.split(root)
    x = jax.random.normal(kx, (B, C, IMG, IMG), dtype=jnp.float32)
    params = init_params(kp)

    out = jax.block_until_ready(clip_encode_image(x, params))
    assert out.shape == (B, OUT), out.shape
    assert bool(jnp.all(jnp.isfinite(out)))

    ref = jax.block_until_ready(reference_encode_image(x, params))
    assert bool(jnp.allclose(out, ref, rtol=2e-2, atol=2e-2)), (
        "mismatch vs pure-JAX reference")

    print("KERNEL_OK")
</pallas_src>

<mosaic_0001>
module attributes {stable_mosaic.version = 11 : i64} {
  func.func @clip_encode_image_kernel(%arg0: i32, %arg1: memref<8x192xbf16, #tpu.memory_space<vmem>>, %arg2: memref<8x32xf32, #tpu.memory_space<vmem>>, %arg3: memref<192x32xbf16, #tpu.memory_space<vmem>>, %arg4: memref<1x32xf32, #tpu.memory_space<vmem>>, %arg5: memref<1x32xf32, #tpu.memory_space<vmem>>, %arg6: memref<2x1x32xf32, #tpu.memory_space<vmem>>, %arg7: memref<2x1x32xf32, #tpu.memory_space<vmem>>, %arg8: memref<2x32x96xbf16, #tpu.memory_space<vmem>>, %arg9: memref<2x1x96xf32, #tpu.memory_space<vmem>>, %arg10: memref<2x32x32xbf16, #tpu.memory_space<vmem>>, %arg11: memref<2x1x32xf32, #tpu.memory_space<vmem>>, %arg12: memref<2x1x32xf32, #tpu.memory_space<vmem>>, %arg13: memref<2x1x32xf32, #tpu.memory_space<vmem>>, %arg14: memref<2x32x128xbf16, #tpu.memory_space<vmem>>, %arg15: memref<2x1x128xf32, #tpu.memory_space<vmem>>, %arg16: memref<2x128x32xbf16, #tpu.memory_space<vmem>>, %arg17: memref<2x1x32xf32, #tpu.memory_space<vmem>>, %arg18: memref<1x32xf32, #tpu.memory_space<vmem>>, %arg19: memref<1x32xf32, #tpu.memory_space<vmem>>, %arg20: memref<32x128xbf16, #tpu.memory_space<vmem>>, %arg21: memref<1x1x128xf32, #tpu.memory_space<vmem>>) attributes {dimension_semantics = [#tpu.dimension_semantics<parallel>], iteration_bounds = array<i64: 2>, scalar_prefetch = 0 : i64, scratch_operands = 0 : i64, tpu.core_type = #tpu.core_type<tc>, window_params = [{transform_indices = @transform_0, window_bounds = array<i64: 8, 192>}, {pipeline_mode = #tpu.pipeline_mode<synchronous>, transform_indices = @transform_1, window_bounds = array<i64: 8, 32>}, {pipeline_mode = #tpu.pipeline_mode<synchronous>, transform_indices = @transform_2, window_bounds = array<i64: 192, 32>}, {pipeline_mode = #tpu.pipeline_mode<synchronous>, transform_indices = @transform_3, window_bounds = array<i64: 1, 32>}, {pipeline_mode = #tpu.pipeline_mode<synchronous>, transform_indices = @transform_4, window_bounds = array<i64: 1, 32>}, {pipeline_mode = #tpu.pipeline_mode<synchronous>, transform_indices = @transform_5, window_bounds = array<i64: 2, 1, 32>}, {pipeline_mode = #tpu.pipeline_mode<synchronous>, transform_indices = @transform_6, window_bounds = array<i64: 2, 1, 32>}, {pipeline_mode = #tpu.pipeline_mode<synchronous>, transform_indices = @transform_7, window_bounds = array<i64: 2, 32, 96>}, {pipeline_mode = #tpu.pipeline_mode<synchronous>, transform_indices = @transform_8, window_bounds = array<i64: 2, 1, 96>}, {pipeline_mode = #tpu.pipeline_mode<synchronous>, transform_indices = @transform_9, window_bounds = array<i64: 2, 32, 32>}, {pipeline_mode = #tpu.pipeline_mode<synchronous>, transform_indices = @transform_10, window_bounds = array<i64: 2, 1, 32>}, {pipeline_mode = #tpu.pipeline_mode<synchronous>, transform_indices = @transform_11, window_bounds = array<i64: 2, 1, 32>}, {pipeline_mode = #tpu.pipeline_mode<synchronous>, transform_indices = @transform_12, window_bounds = array<i64: 2, 1, 32>}, {pipeline_mode = #tpu.pipeline_mode<synchronous>, transform_indices = @transform_13, window_bounds = array<i64: 2, 32, 128>}, {pipeline_mode = #tpu.pipeline_mode<synchronous>, transform_indices = @transform_14, window_bounds = array<i64: 2, 1, 128>}, {pipeline_mode = #tpu.pipeline_mode<synchronous>, transform_indices = @transform_15, window_bounds = array<i64: 2, 128, 32>}, {pipeline_mode = #tpu.pipeline_mode<synchronous>, transform_indices = @transform_16, window_bounds = array<i64: 2, 1, 32>}, {pipeline_mode = #tpu.pipeline_mode<synchronous>, transform_indices = @transform_17, window_bounds = array<i64: 1, 32>}, {pipeline_mode = #tpu.pipeline_mode<synchronous>, transform_indices = @transform_18, window_bounds = array<i64: 1, 32>}, {pipeline_mode = #tpu.pipeline_mode<synchronous>, transform_indices = @transform_19, window_bounds = array<i64: 32, 128>}, {transform_indices = @transform_20, window_bounds = array<i64: 1, 1, 128>}]} {
    %c0 = arith.constant 0 : index
    %c0_0 = arith.constant 0 : index
    %0 = vector.load %arg1[%c0, %c0_0] : memref<8x192xbf16, #tpu.memory_space<vmem>>, vector<8x192xbf16>
    %c0_1 = arith.constant 0 : index
    %c0_2 = arith.constant 0 : index
    %1 = vector.load %arg3[%c0_1, %c0_2] : memref<192x32xbf16, #tpu.memory_space<vmem>>, vector<192x32xbf16>
    %cst = arith.constant dense<0.000000e+00> : vector<8x32xf32>
    %2 = tpu.matmul %0, %1, %cst {dimension_numbers = #tpu.dot_dimension_numbers<[1], [0], [0], [1], [0, 0, 1, 1], [], []>} : vector<8x192xbf16>, vector<192x32xbf16>, vector<8x32xf32> -> vector<8x32xf32>
    %c0_3 = arith.constant 0 : index
    %c0_4 = arith.constant 0 : index
    %3 = vector.load %arg2[%c0_3, %c0_4] : memref<8x32xf32, #tpu.memory_space<vmem>>, vector<8x32xf32>
    %4 = arith.addf %2, %3 : vector<8x32xf32>
    %c0_5 = arith.constant 0 : index
    %c0_6 = arith.constant 0 : index
    %5 = vector.load %arg4[%c0_5, %c0_6] : memref<1x32xf32, #tpu.memory_space<vmem>>, vector<1x32xf32>
    %c0_7 = arith.constant 0 : index
    %c0_8 = arith.constant 0 : index
    %6 = vector.load %arg5[%c0_7, %c0_8] : memref<1x32xf32, #tpu.memory_space<vmem>>, vector<1x32xf32>
    %cst_9 = arith.constant dense<0.000000e+00> : vector<8xf32>
    %7 = vector.multi_reduction <add>, %4, %cst_9 [1] : vector<8x32xf32> to vector<8xf32>
    %8 = vector.shape_cast %7 : vector<8xf32> to vector<8x1xf32>
    %cst_10 = arith.constant 3.200000e+01 : f32
    %9 = vector.broadcast %cst_10 : f32 to vector<8x1xf32>
    %10 = arith.divf %8, %9 : vector<8x1xf32>
    %11 = vector.broadcast %10 : vector<8x1xf32> to vector<8x32xf32>
    %12 = arith.subf %4, %11 : vector<8x32xf32>
    %13 = arith.mulf %12, %12 : vector<8x32xf32>
    %cst_11 = arith.constant dense<0.000000e+00> : vector<8xf32>
    %14 = vector.multi_reduction <add>, %13, %cst_11 [1] : vector<8x32xf32> to vector<8xf32>
    %15 = vector.shape_cast %14 : vector<8xf32> to vector<8x1xf32>
    %cst_12 = arith.constant 3.200000e+01 : f32
    %16 = vector.broadcast %cst_12 : f32 to vector<8x1xf32>
    %17 = arith.divf %15, %16 : vector<8x1xf32>
    %18 = vector.broadcast %10 : vector<8x1xf32> to vector<8x32xf32>
    %19 = arith.subf %4, %18 : vector<8x32xf32>
    %cst_13 = arith.constant 9.99999974E-6 : f32
    %20 = vector.broadcast %cst_13 : f32 to vector<8x1xf32>
    %21 = arith.addf %17, %20 : vector<8x1xf32>
    %22 = math.rsqrt %21 : vector<8x1xf32>
    %23 = vector.broadcast %22 : vector<8x1xf32> to vector<8x32xf32>
    %24 = arith.mulf %19, %23 : vector<8x32xf32>
    %25 = vector.broadcast %5 : vector<1x32xf32> to vector<8x32xf32>
    %26 = arith.mulf %24, %25 : vector<8x32xf32>
    %27 = vector.broadcast %6 : vector<1x32xf32> to vector<8x32xf32>
    %28 = arith.addf %26, %27 : vector<8x32xf32>
    %29 = tpu.iota {dimensions = array<i32: 2>} : vector<1x8x8xi32>
    %c5_i32 = arith.constant 5 : i32
    %30 = vector.broadcast %c5_i32 : i32 to vector<1x8x8xi32>
    %31 = arith.cmpi slt, %29, %30 : vector<1x8x8xi32>
    %c0_14 = arith.constant 0 : index
    %c0_15 = arith.constant 0 : index
    %c0_16 = arith.constant 0 : index
    %32 = vector.load %arg6[%c0_14, %c0_15, %c0_16] : memref<2x1x32xf32, #tpu.memory_space<vmem>>, vector<1x1x32xf32>
    %33 = vector.shape_cast %32 : vector<1x1x32xf32> to vector<1x32xf32>
    %c0_17 = arith.constant 0 : index
    %c0_18 = arith.constant 0 : index
    %c0_19 = arith.constant 0 : index
    %34 = vector.load %arg7[%c0_17, %c0_18, %c0_19] : memref<2x1x32xf32, #tpu.memory_space<vmem>>, vector<1x1x32xf32>
    %35 = vector.shape_cast %34 : vector<1x1x32xf32> to vector<1x32xf32>
    %cst_20 = arith.constant dense<0.000000e+00> : vector<8xf32>
    %36 = vector.multi_reduction <add>, %28, %cst_20 [1] : vector<8x32xf32> to vector<8xf32>
    %37 = vector.shape_cast %36 : vector<8xf32> to vector<8x1xf32>
    %cst_21 = arith.constant 3.200000e+01 : f32
    %38 = vector.broadcast %cst_21 : f32 to vector<8x1xf32>
    %39 = arith.divf %37, %38 : vector<8x1xf32>
    %40 = vector.broadcast %39 : vector<8x1xf32> to vector<8x32xf32>
    %41 = arith.subf %28, %40 : vector<8x32xf32>
    %42 = arith.mulf %41, %41 : vector<8x32xf32>
    %cst_22 = arith.constant dense<0.000000e+00> : vector<8xf32>
    %43 = vector.multi_reduction <add>, %42, %cst_22 [1] : vector<8x32xf32> to vector<8xf32>
    %44 = vector.shape_cast %43 : vector<8xf32> to vector<8x1xf32>
    %cst_23 = arith.constant 3.200000e+01 : f32
    %45 = vector.broadcast %cst_23 : f32 to vector<8x1xf32>
    %46 = arith.divf %44, %45 : vector<8x1xf32>
    %47 = vector.broadcast %39 : vector<8x1xf32> to vector<8x32xf32>
    %48 = arith.subf %28, %47 : vector<8x32xf32>
    %cst_24 = arith.constant 9.99999974E-6 : f32
    %49 = vector.broadcast %cst_24 : f32 to vector<8x1xf32>
    %50 = arith.addf %46, %49 : vector<8x1xf32>
    %51 = math.rsqrt %50 : vector<8x1xf32>
    %52 = vector.broadcast %51 : vector<8x1xf32> to vector<8x32xf32>
    %53 = arith.mulf %48, %52 : vector<8x32xf32>
    %54 = vector.broadcast %33 : vector<1x32xf32> to vector<8x32xf32>
    %55 = arith.mulf %53, %54 : vector<8x32xf32>
    %56 = vector.broadcast %35 : vector<1x32xf32> to vector<8x32xf32>
    %57 = arith.addf %55, %56 : vector<8x32xf32>
    %58 = arith.truncf %57 : vector<8x32xf32> to vector<8x32xbf16>
    %c0_25 = arith.constant 0 : index
    %c0_26 = arith.constant 0 : index
    %c0_27 = arith.constant 0 : index
    %59 = vector.load %arg8[%c0_25, %c0_26, %c0_27] : memref<2x32x96xbf16, #tpu.memory_space<vmem>>, vector<1x32x96xbf16>
    %60 = vector.shape_cast %59 : vector<1x32x96xbf16> to vector<32x96xbf16>
    %cst_28 = arith.constant dense<0.000000e+00> : vector<8x96xf32>
    %61 = tpu.matmul %58, %60, %cst_28 {dimension_numbers = #tpu.dot_dimension_numbers<[1], [0], [0], [1], [0, 0, 1, 1], [], []>} : vector<8x32xbf16>, vector<32x96xbf16>, vector<8x96xf32> -> vector<8x96xf32>
    %c0_29 = arith.constant 0 : index
    %c0_30 = arith.constant 0 : index
    %c0_31 = arith.constant 0 : index
    %62 = vector.load %arg9[%c0_29, %c0_30, %c0_31] : memref<2x1x96xf32, #tpu.memory_space<vmem>>, vector<1x1x96xf32>
    %63 = vector.shape_cast %62 : vector<1x1x96xf32> to vector<1x96xf32>
    %64 = vector.broadcast %63 : vector<1x96xf32> to vector<8x96xf32>
    %65 = arith.addf %61, %64 : vector<8x96xf32>
    %66 = vector.shape_cast %65 : vector<8x96xf32> to vector<8x12x8xf32>
    %67 = tpu.transpose %66, [1, 0, 2] : vector<8x12x8xf32> -> vector<12x8x8xf32>
    %68 = arith.truncf %67 : vector<12x8x8xf32> to vector<12x8x8xbf16>
    %69 = vector.extract_strided_slice %68 {offsets = [0, 0, 0], sizes = [4, 8, 8], strides = [1, 1, 1]} : vector<12x8x8xbf16> to vector<4x8x8xbf16>
    %70 = vector.extract_strided_slice %68 {offsets = [4, 0, 0], sizes = [4, 8, 8], strides = [1, 1, 1]} : vector<12x8x8xbf16> to vector<4x8x8xbf16>
    %71 = vector.extract_strided_slice %68 {offsets = [8, 0, 0], sizes = [4, 8, 8], strides = [1, 1, 1]} : vector<12x8x8xbf16> to vector<4x8x8xbf16>
    "tpu.trace_start"() <{level = 10 : i32, message = "hqd,hkd->hqk"}> : () -> ()
    %cst_32 = arith.constant dense<0.000000e+00> : vector<4x8x8xf32>
    %72 = tpu.matmul %69, %70, %cst_32 {dimension_numbers = #tpu.dot_dimension_numbers<[2], [2], [1], [1], [0, 0, 0, 1, 1, 1], [0], [0]>} : vector<4x8x8xbf16>, vector<4x8x8xbf16>, vector<4x8x8xf32> -> vector<4x8x8xf32>
    "tpu.trace_stop"() : () -> ()
    %cst_33 = arith.constant 0.353553385 : f32
    %73 = vector.broadcast %cst_33 : f32 to vector<4x8x8xf32>
    %74 = arith.mulf %72, %73 : vector<4x8x8xf32>
    %cst_34 = arith.constant -1.000000e+09 : f32
    %75 = vector.shape_cast %31 : vector<1x8x8xi1> to vector<1x8x8xi1>
    %76 = vector.broadcast %75 : vector<1x8x8xi1> to vector<4x8x8xi1>
    %77 = vector.broadcast %cst_34 : f32 to vector<4x8x8xf32>
    %78 = arith.select %76, %74, %77 : vector<4x8x8xi1>, vector<4x8x8xf32>
    %cst_35 = arith.constant dense<0xFF800000> : vector<4x8xf32>
    %79 = vector.multi_reduction <maximumf>, %78, %cst_35 [2] : vector<4x8x8xf32> to vector<4x8xf32>
    %80 = vector.shape_cast %79 : vector<4x8xf32> to vector<4x8x1xf32>
    %81 = vector.broadcast %80 : vector<4x8x1xf32> to vector<4x8x8xf32>
    %82 = arith.subf %78, %81 : vector<4x8x8xf32>
    %83 = math.exp %82 : vector<4x8x8xf32>
    %cst_36 = arith.constant dense<0.000000e+00> : vector<4x8xf32>
    %84 = vector.multi_reduction <add>, %83, %cst_36 [2] : vector<4x8x8xf32> to vector<4x8xf32>
    %85 = vector.shape_cast %84 : vector<4x8xf32> to vector<4x8x1xf32>
    %86 = tpu.reciprocal %85 {approx = true} : vector<4x8x1xf32> -> vector<4x8x1xf32>
    %87 = vector.broadcast %86 : vector<4x8x1xf32> to vector<4x8x8xf32>
    %88 = arith.mulf %83, %87 : vector<4x8x8xf32>
    %89 = arith.truncf %88 : vector<4x8x8xf32> to vector<4x8x8xbf16>
    "tpu.trace_start"() <{level = 10 : i32, message = "hqk,hkd->hqd"}> : () -> ()
    %cst_37 = arith.constant dense<0.000000e+00> : vector<4x8x8xf32>
    %90 = tpu.matmul %89, %71, %cst_37 {dimension_numbers = #tpu.dot_dimension_numbers<[2], [1], [1], [2], [0, 0, 0, 1, 1, 2], [0], [0]>} : vector<4x8x8xbf16>, vector<4x8x8xbf16>, vector<4x8x8xf32> -> vector<4x8x8xf32>
    "tpu.trace_stop"() : () -> ()
    %91 = tpu.transpose %90, [1, 0, 2] : vector<4x8x8xf32> -> vector<8x4x8xf32>
    %92 = vector.shape_cast %91 : vector<8x4x8xf32> to vector<8x32xf32>
    %93 = arith.truncf %92 : vector<8x32xf32> to vector<8x32xbf16>
    %c0_38 = arith.constant 0 : index
    %c0_39 = arith.constant 0 : index
    %c0_40 = arith.constant 0 : index
    %94 = vector.load %arg10[%c0_38, %c0_39, %c0_40] : memref<2x32x32xbf16, #tpu.memory_space<vmem>>, vector<1x32x32xbf16>
    %95 = vector.shape_cast %94 : vector<1x32x32xbf16> to vector<32x32xbf16>
    %cst_41 = arith.constant dense<0.000000e+00> : vector<8x32xf32>
    %96 = tpu.matmul %93, %95, %cst_41 {dimension_numbers = #tpu.dot_dimension_numbers<[1], [0], [0], [1], [0, 0, 1, 1], [], []>} : vector<8x32xbf16>, vector<32x32xbf16>, vector<8x32xf32> -> vector<8x32xf32>
    %97 = arith.addf %28, %96 : vector<8x32xf32>
    %c0_42 = arith.constant 0 : index
    %c0_43 = arith.constant 0 : index
    %c0_44 = arith.constant 0 : index
    %98 = vector.load %arg11[%c0_42, %c0_43, %c0_44] : memref<2x1x32xf32, #tpu.memory_space<vmem>>, vector<1x1x32xf32>
    %99 = vector.shape_cast %98 : vector<1x1x32xf32> to vector<1x32xf32>
    %100 = vector.broadcast %99 : vector<1x32xf32> to vector<8x32xf32>
    %101 = arith.addf %97, %100 : vector<8x32xf32>
    %c0_45 = arith.constant 0 : index
    %c0_46 = arith.constant 0 : index
    %c0_47 = arith.constant 0 : index
    %102 = vector.load %arg12[%c0_45, %c0_46, %c0_47] : memref<2x1x32xf32, #tpu.memory_space<vmem>>, vector<1x1x32xf32>
    %103 = vector.shape_cast %102 : vector<1x1x32xf32> to vector<1x32xf32>
    %c0_48 = arith.constant 0 : index
    %c0_49 = arith.constant 0 : index
    %c0_50 = arith.constant 0 : index
    %104 = vector.load %arg13[%c0_48, %c0_49, %c0_50] : memref<2x1x32xf32, #tpu.memory_space<vmem>>, vector<1x1x32xf32>
    %105 = vector.shape_cast %104 : vector<1x1x32xf32> to vector<1x32xf32>
    %cst_51 = arith.constant dense<0.000000e+00> : vector<8xf32>
    %106 = vector.multi_reduction <add>, %101, %cst_51 [1] : vector<8x32xf32> to vector<8xf32>
    %107 = vector.shape_cast %106 : vector<8xf32> to vector<8x1xf32>
    %cst_52 = arith.constant 3.200000e+01 : f32
    %108 = vector.broadcast %cst_52 : f32 to vector<8x1xf32>
    %109 = arith.divf %107, %108 : vector<8x1xf32>
    %110 = vector.broadcast %109 : vector<8x1xf32> to vector<8x32xf32>
    %111 = arith.subf %101, %110 : vector<8x32xf32>
    %112 = arith.mulf %111, %111 : vector<8x32xf32>
    %cst_53 = arith.constant dense<0.000000e+00> : vector<8xf32>
    %113 = vector.multi_reduction <add>, %112, %cst_53 [1] : vector<8x32xf32> to vector<8xf32>
    %114 = vector.shape_cast %113 : vector<8xf32> to vector<8x1xf32>
    %cst_54 = arith.constant 3.200000e+01 : f32
    %115 = vector.broadcast %cst_54 : f32 to vector<8x1xf32>
    %116 = arith.divf %114, %115 : vector<8x1xf32>
    %117 = vector.broadcast %109 : vector<8x1xf32> to vector<8x32xf32>
    %118 = arith.subf %101, %117 : vector<8x32xf32>
    %cst_55 = arith.constant 9.99999974E-6 : f32
    %119 = vector.broadcast %cst_55 : f32 to vector<8x1xf32>
    %120 = arith.addf %116, %119 : vector<8x1xf32>
    %121 = math.rsqrt %120 : vector<8x1xf32>
    %122 = vector.broadcast %121 : vector<8x1xf32> to vector<8x32xf32>
    %123 = arith.mulf %118, %122 : vector<8x32xf32>
    %124 = vector.broadcast %103 : vector<1x32xf32> to vector<8x32xf32>
    %125 = arith.mulf %123, %124 : vector<8x32xf32>
    %126 = vector.broadcast %105 : vector<1x32xf32> to vector<8x32xf32>
    %127 = arith.addf %125, %126 : vector<8x32xf32>
    %128 = arith.truncf %127 : vector<8x32xf32> to vector<8x32xbf16>
    %c0_56 = arith.constant 0 : index
    %c0_57 = arith.constant 0 : index
    %c0_58 = arith.constant 0 : index
    %129 = vector.load %arg14[%c0_56, %c0_57, %c0_58] : memref<2x32x128xbf16, #tpu.memory_space<vmem>>, vector<1x32x128xbf16>
    %130 = vector.shape_cast %129 : vector<1x32x128xbf16> to vector<32x128xbf16>
    %cst_59 = arith.constant dense<0.000000e+00> : vector<8x128xf32>
    %131 = tpu.matmul %128, %130, %cst_59 {dimension_numbers = #tpu.dot_dimension_numbers<[1], [0], [0], [1], [0, 0, 1, 1], [], []>} : vector<8x32xbf16>, vector<32x128xbf16>, vector<8x128xf32> -> vector<8x128xf32>
    %c0_60 = arith.constant 0 : index
    %c0_61 = arith.constant 0 : index
    %c0_62 = arith.constant 0 : index
    %132 = vector.load %arg15[%c0_60, %c0_61, %c0_62] : memref<2x1x128xf32, #tpu.memory_space<vmem>>, vector<1x1x128xf32>
    %133 = vector.shape_cast %132 : vector<1x1x128xf32> to vector<1x128xf32>
    %134 = vector.broadcast %133 : vector<1x128xf32> to vector<8x128xf32>
    %135 = arith.addf %131, %134 : vector<8x128xf32>
    %cst_63 = arith.constant 1.702000e+00 : f32
    %136 = vector.broadcast %cst_63 : f32 to vector<8x128xf32>
    %137 = arith.mulf %136, %135 : vector<8x128xf32>
    %138 = arith.negf %137 : vector<8x128xf32>
    %139 = math.exp %138 : vector<8x128xf32>
    %cst_64 = arith.constant 1.000000e+00 : f32
    %140 = vector.broadcast %cst_64 : f32 to vector<8x128xf32>
    %141 = arith.addf %140, %139 : vector<8x128xf32>
    %142 = arith.divf %140, %141 : vector<8x128xf32>
    %143 = arith.mulf %135, %142 : vector<8x128xf32>
    %144 = arith.truncf %143 : vector<8x128xf32> to vector<8x128xbf16>
    %c0_65 = arith.constant 0 : index
    %c0_66 = arith.constant 0 : index
    %c0_67 = arith.constant 0 : index
    %145 = vector.load %arg16[%c0_65, %c0_66, %c0_67] : memref<2x128x32xbf16, #tpu.memory_space<vmem>>, vector<1x128x32xbf16>
    %146 = vector.shape_cast %145 : vector<1x128x32xbf16> to vector<128x32xbf16>
    %cst_68 = arith.constant dense<0.000000e+00> : vector<8x32xf32>
    %147 = tpu.matmul %144, %146, %cst_68 {dimension_numbers = #tpu.dot_dimension_numbers<[1], [0], [0], [1], [0, 0, 1, 1], [], []>} : vector<8x128xbf16>, vector<128x32xbf16>, vector<8x32xf32> -> vector<8x32xf32>
    %148 = arith.addf %101, %147 : vector<8x32xf32>
    %c0_69 = arith.constant 0 : index
    %c0_70 = arith.constant 0 : index
    %c0_71 = arith.constant 0 : index
    %149 = vector.load %arg17[%c0_69, %c0_70, %c0_71] : memref<2x1x32xf32, #tpu.memory_space<vmem>>, vector<1x1x32xf32>
    %150 = vector.shape_cast %149 : vector<1x1x32xf32> to vector<1x32xf32>
    %151 = vector.broadcast %150 : vector<1x32xf32> to vector<8x32xf32>
    %152 = arith.addf %148, %151 : vector<8x32xf32>
    %c1 = arith.constant 1 : index
    %c0_72 = arith.constant 0 : index
    %c0_73 = arith.constant 0 : index
    %153 = vector.load %arg6[%c1, %c0_72, %c0_73] : memref<2x1x32xf32, #tpu.memory_space<vmem>>, vector<1x1x32xf32>
    %154 = vector.shape_cast %153 : vector<1x1x32xf32> to vector<1x32xf32>
    %c1_74 = arith.constant 1 : index
    %c0_75 = arith.constant 0 : index
    %c0_76 = arith.constant 0 : index
    %155 = vector.load %arg7[%c1_74, %c0_75, %c0_76] : memref<2x1x32xf32, #tpu.memory_space<vmem>>, vector<1x1x32xf32>
    %156 = vector.shape_cast %155 : vector<1x1x32xf32> to vector<1x32xf32>
    %cst_77 = arith.constant dense<0.000000e+00> : vector<8xf32>
    %157 = vector.multi_reduction <add>, %152, %cst_77 [1] : vector<8x32xf32> to vector<8xf32>
    %158 = vector.shape_cast %157 : vector<8xf32> to vector<8x1xf32>
    %cst_78 = arith.constant 3.200000e+01 : f32
    %159 = vector.broadcast %cst_78 : f32 to vector<8x1xf32>
    %160 = arith.divf %158, %159 : vector<8x1xf32>
    %161 = vector.broadcast %160 : vector<8x1xf32> to vector<8x32xf32>
    %162 = arith.subf %152, %161 : vector<8x32xf32>
    %163 = arith.mulf %162, %162 : vector<8x32xf32>
    %cst_79 = arith.constant dense<0.000000e+00> : vector<8xf32>
    %164 = vector.multi_reduction <add>, %163, %cst_79 [1] : vector<8x32xf32> to vector<8xf32>
    %165 = vector.shape_cast %164 : vector<8xf32> to vector<8x1xf32>
    %cst_80 = arith.constant 3.200000e+01 : f32
    %166 = vector.broadcast %cst_80 : f32 to vector<8x1xf32>
    %167 = arith.divf %165, %166 : vector<8x1xf32>
    %168 = vector.broadcast %160 : vector<8x1xf32> to vector<8x32xf32>
    %169 = arith.subf %152, %168 : vector<8x32xf32>
    %cst_81 = arith.constant 9.99999974E-6 : f32
    %170 = vector.broadcast %cst_81 : f32 to vector<8x1xf32>
    %171 = arith.addf %167, %170 : vector<8x1xf32>
    %172 = math.rsqrt %171 : vector<8x1xf32>
    %173 = vector.broadcast %172 : vector<8x1xf32> to vector<8x32xf32>
    %174 = arith.mulf %169, %173 : vector<8x32xf32>
    %175 = vector.broadcast %154 : vector<1x32xf32> to vector<8x32xf32>
    %176 = arith.mulf %174, %175 : vector<8x32xf32>
    %177 = vector.broadcast %156 : vector<1x32xf32> to vector<8x32xf32>
    %178 = arith.addf %176, %177 : vector<8x32xf32>
    %179 = arith.truncf %178 : vector<8x32xf32> to vector<8x32xbf16>
    %c1_82 = arith.constant 1 : index
    %c0_83 = arith.constant 0 : index
    %c0_84 = arith.constant 0 : index
    %180 = vector.load %arg8[%c1_82, %c0_83, %c0_84] : memref<2x32x96xbf16, #tpu.memory_space<vmem>>, vector<1x32x96xbf16>
    %181 = vector.shape_cast %180 : vector<1x32x96xbf16> to vector<32x96xbf16>
    %cst_85 = arith.constant dense<0.000000e+00> : vector<8x96xf32>
    %182 = tpu.matmul %179, %181, %cst_85 {dimension_numbers = #tpu.dot_dimension_numbers<[1], [0], [0], [1], [0, 0, 1, 1], [], []>} : vector<8x32xbf16>, vector<32x96xbf16>, vector<8x96xf32> -> vector<8x96xf32>
    %c1_86 = arith.constant 1 : index
    %c0_87 = arith.constant 0 : index
    %c0_88 = arith.constant 0 : index
    %183 = vector.load %arg9[%c1_86, %c0_87, %c0_88] : memref<2x1x96xf32, #tpu.memory_space<vmem>>, vector<1x1x96xf32>
    %184 = vector.shape_cast %183 : vector<1x1x96xf32> to vector<1x96xf32>
    %185 = vector.broadcast %184 : vector<1x96xf32> to vector<8x96xf32>
    %186 = arith.addf %182, %185 : vector<8x96xf32>
    %187 = vector.shape_cast %186 : vector<8x96xf32> to vector<8x12x8xf32>
    %188 = tpu.transpose %187, [1, 0, 2] : vector<8x12x8xf32> -> vector<12x8x8xf32>
    %189 = arith.truncf %188 : vector<12x8x8xf32> to vector<12x8x8xbf16>
    %190 = vector.extract_strided_slice %189 {offsets = [0, 0, 0], sizes = [4, 8, 8], strides = [1, 1, 1]} : vector<12x8x8xbf16> to vector<4x8x8xbf16>
    %191 = vector.extract_strided_slice %189 {offsets = [4, 0, 0], sizes = [4, 8, 8], strides = [1, 1, 1]} : vector<12x8x8xbf16> to vector<4x8x8xbf16>
    %192 = vector.extract_strided_slice %189 {offsets = [8, 0, 0], sizes = [4, 8, 8], strides = [1, 1, 1]} : vector<12x8x8xbf16> to vector<4x8x8xbf16>
    "tpu.trace_start"() <{level = 10 : i32, message = "hqd,hkd->hqk"}> : () -> ()
    %cst_89 = arith.constant dense<0.000000e+00> : vector<4x8x8xf32>
    %193 = tpu.matmul %190, %191, %cst_89 {dimension_numbers = #tpu.dot_dimension_numbers<[2], [2], [1], [1], [0, 0, 0, 1, 1, 1], [0], [0]>} : vector<4x8x8xbf16>, vector<4x8x8xbf16>, vector<4x8x8xf32> -> vector<4x8x8xf32>
    "tpu.trace_stop"() : () -> ()
    %cst_90 = arith.constant 0.353553385 : f32
    %194 = vector.broadcast %cst_90 : f32 to vector<4x8x8xf32>
    %195 = arith.mulf %193, %194 : vector<4x8x8xf32>
    %cst_91 = arith.constant -1.000000e+09 : f32
    %196 = vector.shape_cast %31 : vector<1x8x8xi1> to vector<1x8x8xi1>
    %197 = vector.broadcast %196 : vector<1x8x8xi1> to vector<4x8x8xi1>
    %198 = vector.broadcast %cst_91 : f32 to vector<4x8x8xf32>
    %199 = arith.select %197, %195, %198 : vector<4x8x8xi1>, vector<4x8x8xf32>
    %cst_92 = arith.constant dense<0xFF800000> : vector<4x8xf32>
    %200 = vector.multi_reduction <maximumf>, %199, %cst_92 [2] : vector<4x8x8xf32> to vector<4x8xf32>
    %201 = vector.shape_cast %200 : vector<4x8xf32> to vector<4x8x1xf32>
    %202 = vector.broadcast %201 : vector<4x8x1xf32> to vector<4x8x8xf32>
    %203 = arith.subf %199, %202 : vector<4x8x8xf32>
    %204 = math.exp %203 : vector<4x8x8xf32>
    %cst_93 = arith.constant dense<0.000000e+00> : vector<4x8xf32>
    %205 = vector.multi_reduction <add>, %204, %cst_93 [2] : vector<4x8x8xf32> to vector<4x8xf32>
    %206 = vector.shape_cast %205 : vector<4x8xf32> to vector<4x8x1xf32>
    %207 = tpu.reciprocal %206 {approx = true} : vector<4x8x1xf32> -> vector<4x8x1xf32>
    %208 = vector.broadcast %207 : vector<4x8x1xf32> to vector<4x8x8xf32>
    %209 = arith.mulf %204, %208 : vector<4x8x8xf32>
    %210 = arith.truncf %209 : vector<4x8x8xf32> to vector<4x8x8xbf16>
    "tpu.trace_start"() <{level = 10 : i32, message = "hqk,hkd->hqd"}> : () -> ()
    %cst_94 = arith.constant dense<0.000000e+00> : vector<4x8x8xf32>
    %211 = tpu.matmul %210, %192, %cst_94 {dimension_numbers = #tpu.dot_dimension_numbers<[2], [1], [1], [2], [0, 0, 0, 1, 1, 2], [0], [0]>} : vector<4x8x8xbf16>, vector<4x8x8xbf16>, vector<4x8x8xf32> -> vector<4x8x8xf32>
    "tpu.trace_stop"() : () -> ()
    %212 = tpu.transpose %211, [1, 0, 2] : vector<4x8x8xf32> -> vector<8x4x8xf32>
    %213 = vector.shape_cast %212 : vector<8x4x8xf32> to vector<8x32xf32>
    %214 = arith.truncf %213 : vector<8x32xf32> to vector<8x32xbf16>
    %c1_95 = arith.constant 1 : index
    %c0_96 = arith.constant 0 : index
    %c0_97 = arith.constant 0 : index
    %215 = vector.load %arg10[%c1_95, %c0_96, %c0_97] : memref<2x32x32xbf16, #tpu.memory_space<vmem>>, vector<1x32x32xbf16>
    %216 = vector.shape_cast %215 : vector<1x32x32xbf16> to vector<32x32xbf16>
    %cst_98 = arith.constant dense<0.000000e+00> : vector<8x32xf32>
    %217 = tpu.matmul %214, %216, %cst_98 {dimension_numbers = #tpu.dot_dimension_numbers<[1], [0], [0], [1], [0, 0, 1, 1], [], []>} : vector<8x32xbf16>, vector<32x32xbf16>, vector<8x32xf32> -> vector<8x32xf32>
    %218 = arith.addf %152, %217 : vector<8x32xf32>
    %c1_99 = arith.constant 1 : index
    %c0_100 = arith.constant 0 : index
    %c0_101 = arith.constant 0 : index
    %219 = vector.load %arg11[%c1_99, %c0_100, %c0_101] : memref<2x1x32xf32, #tpu.memory_space<vmem>>, vector<1x1x32xf32>
    %220 = vector.shape_cast %219 : vector<1x1x32xf32> to vector<1x32xf32>
    %221 = vector.broadcast %220 : vector<1x32xf32> to vector<8x32xf32>
    %222 = arith.addf %218, %221 : vector<8x32xf32>
    %c1_102 = arith.constant 1 : index
    %c0_103 = arith.constant 0 : index
    %c0_104 = arith.constant 0 : index
    %223 = vector.load %arg12[%c1_102, %c0_103, %c0_104] : memref<2x1x32xf32, #tpu.memory_space<vmem>>, vector<1x1x32xf32>
    %224 = vector.shape_cast %223 : vector<1x1x32xf32> to vector<1x32xf32>
    %c1_105 = arith.constant 1 : index
    %c0_106 = arith.constant 0 : index
    %c0_107 = arith.constant 0 : index
    %225 = vector.load %arg13[%c1_105, %c0_106, %c0_107] : memref<2x1x32xf32, #tpu.memory_space<vmem>>, vector<1x1x32xf32>
    %226 = vector.shape_cast %225 : vector<1x1x32xf32> to vector<1x32xf32>
    %cst_108 = arith.constant dense<0.000000e+00> : vector<8xf32>
    %227 = vector.multi_reduction <add>, %222, %cst_108 [1] : vector<8x32xf32> to vector<8xf32>
    %228 = vector.shape_cast %227 : vector<8xf32> to vector<8x1xf32>
    %cst_109 = arith.constant 3.200000e+01 : f32
    %229 = vector.broadcast %cst_109 : f32 to vector<8x1xf32>
    %230 = arith.divf %228, %229 : vector<8x1xf32>
    %231 = vector.broadcast %230 : vector<8x1xf32> to vector<8x32xf32>
    %232 = arith.subf %222, %231 : vector<8x32xf32>
    %233 = arith.mulf %232, %232 : vector<8x32xf32>
    %cst_110 = arith.constant dense<0.000000e+00> : vector<8xf32>
    %234 = vector.multi_reduction <add>, %233, %cst_110 [1] : vector<8x32xf32> to vector<8xf32>
    %235 = vector.shape_cast %234 : vector<8xf32> to vector<8x1xf32>
    %cst_111 = arith.constant 3.200000e+01 : f32
    %236 = vector.broadcast %cst_111 : f32 to vector<8x1xf32>
    %237 = arith.divf %235, %236 : vector<8x1xf32>
    %238 = vector.broadcast %230 : vector<8x1xf32> to vector<8x32xf32>
    %239 = arith.subf %222, %238 : vector<8x32xf32>
    %cst_112 = arith.constant 9.99999974E-6 : f32
    %240 = vector.broadcast %cst_112 : f32 to vector<8x1xf32>
    %241 = arith.addf %237, %240 : vector<8x1xf32>
    %242 = math.rsqrt %241 : vector<8x1xf32>
    %243 = vector.broadcast %242 : vector<8x1xf32> to vector<8x32xf32>
    %244 = arith.mulf %239, %243 : vector<8x32xf32>
    %245 = vector.broadcast %224 : vector<1x32xf32> to vector<8x32xf32>
    %246 = arith.mulf %244, %245 : vector<8x32xf32>
    %247 = vector.broadcast %226 : vector<1x32xf32> to vector<8x32xf32>
    %248 = arith.addf %246, %247 : vector<8x32xf32>
    %249 = arith.truncf %248 : vector<8x32xf32> to vector<8x32xbf16>
    %c1_113 = arith.constant 1 : index
    %c0_114 = arith.constant 0 : index
    %c0_115 = arith.constant 0 : index
    %250 = vector.load %arg14[%c1_113, %c0_114, %c0_115] : memref<2x32x128xbf16, #tpu.memory_space<vmem>>, vector<1x32x128xbf16>
    %251 = vector.shape_cast %250 : vector<1x32x128xbf16> to vector<32x128xbf16>
    %cst_116 = arith.constant dense<0.000000e+00> : vector<8x128xf32>
    %252 = tpu.matmul %249, %251, %cst_116 {dimension_numbers = #tpu.dot_dimension_numbers<[1], [0], [0], [1], [0, 0, 1, 1], [], []>} : vector<8x32xbf16>, vector<32x128xbf16>, vector<8x128xf32> -> vector<8x128xf32>
    %c1_117 = arith.constant 1 : index
    %c0_118 = arith.constant 0 : index
    %c0_119 = arith.constant 0 : index
    %253 = vector.load %arg15[%c1_117, %c0_118, %c0_119] : memref<2x1x128xf32, #tpu.memory_space<vmem>>, vector<1x1x128xf32>
    %254 = vector.shape_cast %253 : vector<1x1x128xf32> to vector<1x128xf32>
    %255 = vector.broadcast %254 : vector<1x128xf32> to vector<8x128xf32>
    %256 = arith.addf %252, %255 : vector<8x128xf32>
    %cst_120 = arith.constant 1.702000e+00 : f32
    %257 = vector.broadcast %cst_120 : f32 to vector<8x128xf32>
    %258 = arith.mulf %257, %256 : vector<8x128xf32>
    %259 = arith.negf %258 : vector<8x128xf32>
    %260 = math.exp %259 : vector<8x128xf32>
    %cst_121 = arith.constant 1.000000e+00 : f32
    %261 = vector.broadcast %cst_121 : f32 to vector<8x128xf32>
    %262 = arith.addf %261, %260 : vector<8x128xf32>
    %263 = arith.divf %261, %262 : vector<8x128xf32>
    %264 = arith.mulf %256, %263 : vector<8x128xf32>
    %265 = arith.truncf %264 : vector<8x128xf32> to vector<8x128xbf16>
    %c1_122 = arith.constant 1 : index
    %c0_123 = arith.constant 0 : index
    %c0_124 = arith.constant 0 : index
    %266 = vector.load %arg16[%c1_122, %c0_123, %c0_124] : memref<2x128x32xbf16, #tpu.memory_space<vmem>>, vector<1x128x32xbf16>
    %267 = vector.shape_cast %266 : vector<1x128x32xbf16> to vector<128x32xbf16>
    %cst_125 = arith.constant dense<0.000000e+00> : vector<8x32xf32>
    %268 = tpu.matmul %265, %267, %cst_125 {dimension_numbers = #tpu.dot_dimension_numbers<[1], [0], [0], [1], [0, 0, 1, 1], [], []>} : vector<8x128xbf16>, vector<128x32xbf16>, vector<8x32xf32> -> vector<8x32xf32>
    %269 = arith.addf %222, %268 : vector<8x32xf32>
    %c1_126 = arith.constant 1 : index
    %c0_127 = arith.constant 0 : index
    %c0_128 = arith.constant 0 : index
    %270 = vector.load %arg17[%c1_126, %c0_127, %c0_128] : memref<2x1x32xf32, #tpu.memory_space<vmem>>, vector<1x1x32xf32>
    %271 = vector.shape_cast %270 : vector<1x1x32xf32> to vector<1x32xf32>
    %272 = vector.broadcast %271 : vector<1x32xf32> to vector<8x32xf32>
    %273 = arith.addf %269, %272 : vector<8x32xf32>
    %274 = vector.extract_strided_slice %273 {offsets = [0, 0], sizes = [1, 32], strides = [1, 1]} : vector<8x32xf32> to vector<1x32xf32>
    %c0_129 = arith.constant 0 : index
    %c0_130 = arith.constant 0 : index
    %275 = vector.load %arg18[%c0_129, %c0_130] : memref<1x32xf32, #tpu.memory_space<vmem>>, vector<1x32xf32>
    %c0_131 = arith.constant 0 : index
    %c0_132 = arith.constant 0 : index
    %276 = vector.load %arg19[%c0_131, %c0_132] : memref<1x32xf32, #tpu.memory_space<vmem>>, vector<1x32xf32>
    %cst_133 = arith.constant dense<0.000000e+00> : vector<1xf32>
    %277 = vector.multi_reduction <add>, %274, %cst_133 [1] : vector<1x32xf32> to vector<1xf32>
    %278 = vector.shape_cast %277 : vector<1xf32> to vector<1x1xf32>
    %cst_134 = arith.constant 3.200000e+01 : f32
    %279 = vector.broadcast %cst_134 : f32 to vector<1x1xf32>
    %280 = arith.divf %278, %279 : vector<1x1xf32>
    %281 = vector.broadcast %280 : vector<1x1xf32> to vector<1x32xf32>
    %282 = arith.subf %274, %281 : vector<1x32xf32>
    %283 = arith.mulf %282, %282 : vector<1x32xf32>
    %cst_135 = arith.constant dense<0.000000e+00> : vector<1xf32>
    %284 = vector.multi_reduction <add>, %283, %cst_135 [1] : vector<1x32xf32> to vector<1xf32>
    %285 = vector.shape_cast %284 : vector<1xf32> to vector<1x1xf32>
    %cst_136 = arith.constant 3.200000e+01 : f32
    %286 = vector.broadcast %cst_136 : f32 to vector<1x1xf32>
    %287 = arith.divf %285, %286 : vector<1x1xf32>
    %288 = vector.broadcast %280 : vector<1x1xf32> to vector<1x32xf32>
    %289 = arith.subf %274, %288 : vector<1x32xf32>
    %cst_137 = arith.constant 9.99999974E-6 : f32
    %290 = vector.broadcast %cst_137 : f32 to vector<1x1xf32>
    %291 = arith.addf %287, %290 : vector<1x1xf32>
    %292 = math.rsqrt %291 : vector<1x1xf32>
    %293 = vector.broadcast %292 : vector<1x1xf32> to vector<1x32xf32>
    %294 = arith.mulf %289, %293 : vector<1x32xf32>
    %295 = arith.mulf %294, %275 : vector<1x32xf32>
    %296 = arith.addf %295, %276 : vector<1x32xf32>
    %297 = arith.truncf %296 : vector<1x32xf32> to vector<1x32xbf16>
    %c0_138 = arith.constant 0 : index
    %c0_139 = arith.constant 0 : index
    %298 = vector.load %arg20[%c0_138, %c0_139] : memref<32x128xbf16, #tpu.memory_space<vmem>>, vector<32x128xbf16>
    %cst_140 = arith.constant dense<0.000000e+00> : vector<1x128xf32>
    %299 = tpu.matmul %297, %298, %cst_140 {dimension_numbers = #tpu.dot_dimension_numbers<[1], [0], [0], [1], [0, 0, 1, 1], [], []>} : vector<1x32xbf16>, vector<32x128xbf16>, vector<1x128xf32> -> vector<1x128xf32>
    %c0_141 = arith.constant 0 : index
    %c0_142 = arith.constant 0 : index
    %c0_143 = arith.constant 0 : index
    %300 = vector.load %arg21[%c0_141, %c0_142, %c0_143] : memref<1x1x128xf32, #tpu.memory_space<vmem>>, vector<1x1x128xf32>
    %301 = vector.shape_cast %300 : vector<1x1x128xf32> to vector<1x128xf32>
    %302 = vector.shape_cast %299 : vector<1x128xf32> to vector<1x1x128xf32>
    tpu.vector_store %arg21[%c0_141, %c0_142, %c0_143], %302 {strides = array<i32>} : memref<1x1x128xf32, #tpu.memory_space<vmem>>, vector<1x1x128xf32>,
    return
  }
  func.func @transform_0(%arg0: i32) -> (i32, i32) {
    %c0_i32 = arith.constant 0 : i32
    %c0_i32_0 = arith.constant 0 : i32
    return %arg0, %c0_i32 : i32, i32
  }
  func.func @transform_1(%arg0: i32) -> (i32, i32) {
    %c0_i32 = arith.constant 0 : i32
    %c0_i32_0 = arith.constant 0 : i32
    %c0_i32_1 = arith.constant 0 : i32
    return %c0_i32, %c0_i32_0 : i32, i32
  }
  func.func @transform_2(%arg0: i32) -> (i32, i32) {
    %c0_i32 = arith.constant 0 : i32
    %c0_i32_0 = arith.constant 0 : i32
    %c0_i32_1 = arith.constant 0 : i32
    return %c0_i32, %c0_i32_0 : i32, i32
  }
  func.func @transform_3(%arg0: i32) -> (i32, i32) {
    %c0_i32 = arith.constant 0 : i32
    %c0_i32_0 = arith.constant 0 : i32
    %c0_i32_1 = arith.constant 0 : i32
    return %c0_i32, %c0_i32_0 : i32, i32
  }
  func.func @transform_4(%arg0: i32) -> (i32, i32) {
    %c0_i32 = arith.constant 0 : i32
    %c0_i32_0 = arith.constant 0 : i32
    %c0_i32_1 = arith.constant 0 : i32
    return %c0_i32, %c0_i32_0 : i32, i32
  }
  func.func @transform_5(%arg0: i32) -> (i32, i32, i32) {
    %c0_i32 = arith.constant 0 : i32
    %c0_i32_0 = arith.constant 0 : i32
    %c0_i32_1 = arith.constant 0 : i32
    %c0_i32_2 = arith.constant 0 : i32
    return %c0_i32, %c0_i32_0, %c0_i32_1 : i32, i32, i32
  }
  func.func @transform_6(%arg0: i32) -> (i32, i32, i32) {
    %c0_i32 = arith.constant 0 : i32
    %c0_i32_0 = arith.constant 0 : i32
    %c0_i32_1 = arith.constant 0 : i32
    %c0_i32_2 = arith.constant 0 : i32
    return %c0_i32, %c0_i32_0, %c0_i32_1 : i32, i32, i32
  }
  func.func @transform_7(%arg0: i32) -> (i32, i32, i32) {
    %c0_i32 = arith.constant 0 : i32
    %c0_i32_0 = arith.constant 0 : i32
    %c0_i32_1 = arith.constant 0 : i32
    %c0_i32_2 = arith.constant 0 : i32
    return %c0_i32, %c0_i32_0, %c0_i32_1 : i32, i32, i32
  }
  func.func @transform_8(%arg0: i32) -> (i32, i32, i32) {
    %c0_i32 = arith.constant 0 : i32
    %c0_i32_0 = arith.constant 0 : i32
    %c0_i32_1 = arith.constant 0 : i32
    %c0_i32_2 = arith.constant 0 : i32
    return %c0_i32, %c0_i32_0, %c0_i32_1 : i32, i32, i32
  }
  func.func @transform_9(%arg0: i32) -> (i32, i32, i32) {
    %c0_i32 = arith.constant 0 : i32
    %c0_i32_0 = arith.constant 0 : i32
    %c0_i32_1 = arith.constant 0 : i32
    %c0_i32_2 = arith.constant 0 : i32
    return %c0_i32, %c0_i32_0, %c0_i32_1 : i32, i32, i32
  }
  func.func @transform_10(%arg0: i32) -> (i32, i32, i32) {
    %c0_i32 = arith.constant 0 : i32
    %c0_i32_0 = arith.constant 0 : i32
    %c0_i32_1 = arith.constant 0 : i32
    %c0_i32_2 = arith.constant 0 : i32
    return %c0_i32, %c0_i32_0, %c0_i32_1 : i32, i32, i32
  }
  func.func @transform_11(%arg0: i32) -> (i32, i32, i32) {
    %c0_i32 = arith.constant 0 : i32
    %c0_i32_0 = arith.constant 0 : i32
    %c0_i32_1 = arith.constant 0 : i32
    %c0_i32_2 = arith.constant 0 : i32
    return %c0_i32, %c0_i32_0, %c0_i32_1 : i32, i32, i32
  }
  func.func @transform_12(%arg0: i32) -> (i32, i32, i32) {
    %c0_i32 = arith.constant 0 : i32
    %c0_i32_0 = arith.constant 0 : i32
    %c0_i32_1 = arith.constant 0 : i32
    %c0_i32_2 = arith.constant 0 : i32
    return %c0_i32, %c0_i32_0, %c0_i32_1 : i32, i32, i32
  }
  func.func @transform_13(%arg0: i32) -> (i32, i32, i32) {
    %c0_i32 = arith.constant 0 : i32
    %c0_i32_0 = arith.constant 0 : i32
    %c0_i32_1 = arith.constant 0 : i32
    %c0_i32_2 = arith.constant 0 : i32
    return %c0_i32, %c0_i32_0, %c0_i32_1 : i32, i32, i32
  }
  func.func @transform_14(%arg0: i32) -> (i32, i32, i32) {
    %c0_i32 = arith.constant 0 : i32
    %c0_i32_0 = arith.constant 0 : i32
    %c0_i32_1 = arith.constant 0 : i32
    %c0_i32_2 = arith.constant 0 : i32
    return %c0_i32, %c0_i32_0, %c0_i32_1 : i32, i32, i32
  }
  func.func @transform_15(%arg0: i32) -> (i32, i32, i32) {
    %c0_i32 = arith.constant 0 : i32
    %c0_i32_0 = arith.constant 0 : i32
    %c0_i32_1 = arith.constant 0 : i32
    %c0_i32_2 = arith.constant 0 : i32
    return %c0_i32, %c0_i32_0, %c0_i32_1 : i32, i32, i32
  }
  func.func @transform_16(%arg0: i32) -> (i32, i32, i32) {
    %c0_i32 = arith.constant 0 : i32
    %c0_i32_0 = arith.constant 0 : i32
    %c0_i32_1 = arith.constant 0 : i32
    %c0_i32_2 = arith.constant 0 : i32
    return %c0_i32, %c0_i32_0, %c0_i32_1 : i32, i32, i32
  }
  func.func @transform_17(%arg0: i32) -> (i32, i32) {
    %c0_i32 = arith.constant 0 : i32
    %c0_i32_0 = arith.constant 0 : i32
    %c0_i32_1 = arith.constant 0 : i32
    return %c0_i32, %c0_i32_0 : i32, i32
  }
  func.func @transform_18(%arg0: i32) -> (i32, i32) {
    %c0_i32 = arith.constant 0 : i32
    %c0_i32_0 = arith.constant 0 : i32
    %c0_i32_1 = arith.constant 0 : i32
    return %c0_i32, %c0_i32_0 : i32, i32
  }
  func.func @transform_19(%arg0: i32) -> (i32, i32) {
    %c0_i32 = arith.constant 0 : i32
    %c0_i32_0 = arith.constant 0 : i32
    %c0_i32_1 = arith.constant 0 : i32
    return %c0_i32, %c0_i32_0 : i32, i32
  }
  func.func @transform_20(%arg0: i32) -> (i32, i32, i32) {
    %c0_i32 = arith.constant 0 : i32
    %c0_i32_0 = arith.constant 0 : i32
    %c0_i32_1 = arith.constant 0 : i32
    return %arg0, %c0_i32, %c0_i32_0 : i32, i32, i32
  }
}

</mosaic_0001>

<bundles_post_ra>
// kernel: tpu_custom_call.1
= control target key start
LH: loop header
LB: loop body
LE: loop exit
PB: predicated region body
PF: predicated region fallthrough
CT: control target
= control target key end

     0   :  { %s4354_s0 = inlined_call_operand.vmem [shape: bf16[16,192], index: 0, kind: input, shape index: {}]   ;;  %s4355_s1 = inlined_call_operand.vmem [shape: f32[8,32], index: 1, kind: input, shape index: {}]   ;;  %s4356_s2 = inlined_call_operand.vmem [shape: bf16[192,32], index: 2, kind: input, shape index: {}]   ;;  %s4357_s3 = inlined_call_operand.vmem [shape: f32[1,32], index: 3, kind: input, shape index: {}]   ;;  %s4358_s4 = inlined_call_operand.vmem [shape: f32[1,32], index: 4, kind: input, shape index: {}]   ;;  %s4359_s5 = inlined_call_operand.vmem [shape: f32[2,1,32], index: 5, kind: input, shape index: {}]   ;;  %s4360_s6 = inlined_call_operand.vmem [shape: f32[2,1,32], index: 6, kind: input, shape index: {}]   ;;  %s4361_s7 = inlined_call_operand.vmem [shape: bf16[2,32,96], index: 7, kind: input, shape index: {}]   ;;  %s4362_s8 = inlined_call_operand.vmem [shape: f32[2,1,96], index: 8, kind: input, shape index: {}]   ;;  %s4363_s9 = inlined_call_operand.vmem [shape: bf16[2,32,32], index: 9, kind: input, shape index: {}]   ;;  %s4364_s10 = inlined_call_operand.vmem [shape: f32[2,1,32], index: 10, kind: input, shape index: {}]   ;;  %s4365_s11 = inlined_call_operand.vmem [shape: f32[2,1,32], index: 11, kind: input, shape index: {}]   ;;  %s4366_s12 = inlined_call_operand.vmem [shape: f32[2,1,32], index: 12, kind: input, shape index: {}]   ;;  %s4367_s13 = inlined_call_operand.vmem [shape: bf16[2,32,128], index: 13, kind: input, shape index: {}]   ;;  %s4368_s14 = inlined_call_operand.vmem [shape: f32[2,1,128], index: 14, kind: input, shape index: {}]   ;;  %s4369_s15 = inlined_call_operand.vmem [shape: bf16[2,128,32], index: 15, kind: input, shape index: {}]   ;;  %s4370_s16 = inlined_call_operand.vmem [shape: f32[2,1,32], index: 16, kind: input, shape index: {}]   ;;  %s4371_s17 = inlined_call_operand.vmem [shape: f32[1,32], index: 17, kind: input, shape index: {}]   ;;  %s4372_s18 = inlined_call_operand.vmem [shape: f32[1,32], index: 18, kind: input, shape index: {}]   ;;  %s4373_s19 = inlined_call_operand.vmem [shape: bf16[32,128], index: 19, kind: input, shape index: {}]   ;;  %s4374_s20 = inlined_call_operand.hbm [shape: f32[2,1,128], index: 20, kind: output, shape index: {}]  }
   0x1   :  { %4396 = sst [smem:[#allocation12_spill]] %s4354_s0 }
   0x2   :  { %4397 = sst [smem:[#allocation13_spill]] %s4355_s1 }
   0x3   :  { %4398 = sst [smem:[#allocation14_spill]] %s4356_s2 }
   0x4   :  { %4399 = sst [smem:[#allocation15_spill]] %s4357_s3 }
   0x5   :  { %4400 = sst [smem:[#allocation16_spill]] %s4358_s4 }
   0x6   :  { %4401 = sst [smem:[#allocation17_spill]] %s4359_s5 }
   0x7   :  { %4402 = sst [smem:[#allocation18_spill]] %s4360_s6 }
   0x8   :  { %4403 = sst [smem:[#allocation19_spill]] %s4374_s20 }
   0x9   :  { %25 = vsyncpa [#allocation3], 0 }
   0xa   :  { %27 = vsyncpa [#allocation3 + $0x1], 0  ;;  %s3538_s1 = smov 0   ;;  %s3540_s22 = smov 0  }
   0xb   :  { %s3542_s23 = smov 0   ;;  %s3544_s24 = smov 0  }
   0xc LB: > { %4404 = sst [smem:[#allocation5_spill]] %s3402_s1  ;;  %s3559_s2 = sadd.s32 4294967295, %s3414_s24   ;;  %s3414_s24 = sphi %s3544_s24, %s4436_s24   ;;  %s3410_s23 = sphi %s3542_s23, %s4438_s23   ;;  %s3406_s22 = sphi %s3540_s22, %s4440_s22   ;;  %s3402_s1 = sphi %s3538_s1, %s4439_s1  }
   0xd   : > { %4405 = sst [smem:[#allocation6_spill]] %s3410_s23  ;;  %s2943_s25 = sadd.s32 4294967294, %s3414_s24  }
   0xe   : > { %4406 = sst [smem:[#allocation7_spill]] %s3414_s24  ;;  %s3563_s3 = sadd.s32 1, %s3414_s24  }
   0xf   : > { %4407 = sst [smem:[#allocation8_spill]] %s3563_s3  ;;  %s465_s26 = sadd.s32 1, %s3410_s23 }
  0x10   : > { %s462_s27 = ssub.s32 %s3414_s24, %s3563_s3  ;;  %p475_p0 = scmp.ne.s32.totalorder %s3410_s23, %s3406_s22 }
  0x11   : > { %p463_p1 = scmp.eq.s32.totalorder %s462_s27, 0  ;;  %p476_p2 = scmp.eq.s32.totalorder %s3559_s2, 1 }
  0x12   : > { %p481_p3 = scmp.ne.s32.totalorder %s3406_s22, %s3402_s1  ;;  %p482_p4 = scmp.eq.s32.totalorder %s2943_s25, 1 }
  0x13   : > { %s3574_s28 = scalar_select %p463_p1, %s3410_s23, %s465_s26  }
  0x14   : > { %p3576_p5 = por %p476_p2, %p475_p0  ;;  %p3580_p6 = por %p482_p4, %p481_p3 }
  0x15   : > { %4408 = sst [smem:[#allocation9_spill]] %s3574_s28  ;;  %p2946_p7 = scmp.ge.s32.totalorder %s3414_s24, 1 }
  0x16   : > { %s4409_s4 = scalar_select %p3576_p5, 1, 0 }
  0x17   : > { %s4411_s29 = scalar_select %p3580_p6, 1, 0 }
  0x18   : > { %4410 = sst [smem:[#allocation10_spill]] %s4409_s4  ;;  %p565_p8 = scmp.lt.s32.totalorder %s3414_s24, 3 }
  0x19   : > { %4412 = sst [smem:[#allocation11_spill]] %s4411_s29 }
  0x1a   : > { %p566_p9 = pnand %p2946_p7, %p565_p8 }
  0x1b   : > { %s4413_s21 = sld [smem:[#allocation14_spill]] (!%p566_p9)  ;;  %p622_p10 = scmp.lt.s32.totalorder (!%p566_p9), %s3559_s2, 1 }
  0x1c   : > { %569 = sbr.rel (%p566_p9) target bundleno = 4777 (0x12a9), region = 100  ;;  %s4414_s4 = sld [smem:[#allocation12_spill]] (!%p566_p9) }
  0x1d   : > { %s4415_s3 = sld [smem:[#allocation13_spill]] (!%p566_p9)  ;;  %s4393_s24 = smov (!%p566_p9), 112  }
  0x1e   : > { %s4416_s20 = sld [smem:[#allocation15_spill]] (!%p566_p9)  ;;  %s3420_s30 = smov (!%p566_p9), 104  }
  0x1f   : > { %s4418_s5 = sld [smem:[#allocation17_spill]] (!%p566_p9)  ;;  %s4394_s0 = smov (!%p566_p9), 96  }
  0x20   : > { %s4419_s6 = sld [smem:[#allocation18_spill]] (!%p566_p9)  ;;  %s4392_s25 = smov (!%p566_p9), 72  }
  0x21   : > { %v3189_v0 = vld [vmem:[%s4413_s21 + $0x38] sm:$0xff]  ;;  %v3188_v2 = vld [vmem:[%s4413_s21 + $0x30] sm:$0xff]  ;;  %s623_s23 = scalar_select %p622_p10, %s3559_s2, 1  ;;  %v3187_v4 = vld [vmem:[%s4413_s21 + $0x28] sm:$0xff]  ;;  %vm732_vm0 = vcmask 523264   ;;  %vm764_vm1 = vcmask 261120  }
  0x22   : > { %v3193_v1 = vld [vmem:[%s4413_s21 + $0x58] sm:$0xff]  ;;  %736 = vmatpush.bf16.msra.mxu0 %v3189_v0  ;;  %v3192_v3 = vld [vmem:[%s4413_s21 + $0x50] sm:$0xff]  ;;  %v3191_v5 = vld [vmem:[%s4413_s21 + $0x48] sm:$0xff]  ;;  %v3416_v25 = vmov 32.0   ;;  %s4395_s26 = smov 80   ;;  %vm909_vm9 = vcmask 1047556  }
  0x23   : > { %753 = vmatpush.bf16.msra.mxu1 %v3193_v1  ;;  %s3181_s1 = sshll.u32 %s623_s23, 3  ;;  %v3186_v7 = vld [vmem:[%s4413_s21 + $0x20] sm:$0xff]  ;;  %v3185_v10 = vld [vmem:[%s4413_s21 + $0x18] sm:$0xff]  ;;  %v3184_v12 = vld [vmem:[%s4413_s21 + $0x10] sm:$0xff]  ;;  %3298 = vrcp.f32 %v3416_v25  ;;  %vm1255_vm10 = vcmask 64512   ;;  %s4385_s27 = smov 40  }
  0x24   : > { %s626_s28 = scalar_lea.vmem %s4414_s4, %s3181_s1  ;;  %v3190_v9 = vld [vmem:[%s4413_s21 + $0x40] sm:$0xff]  ;;  %v3183_v13 = vld [vmem:[%s4413_s21 + $0x8] sm:$0xff]  ;;  %s4417_s4 = sld [smem:[#allocation16_spill]]  ;;  %vm1393_vm12 = vcmask 1043456   ;;  %vm1590_vm13 = vcmask 130048   ;;  %vm1592_vm14 = vcmask 195584  }
  0x25   : > { %v628_v6 = vld [vmem:[%s626_s28] sm:$0xff]  ;;  %v3195_v58 = vld [vmem:[%s4361_s7 + $0x8] sm:$0xff]  ;;  %s3418_s1 = smov 88   ;;  %s4388_s28 = smov 64  }
  0x26   : > { %737 = vmatpush.bf16.msra.mxu0 %v3188_v2  ;;  %v656_v8 = vunpack.c.h.b16 %v628_v6  ;;  %v655_v14 = vunpack.c.l.b16 %v628_v6  ;;  %v3182_v15 = vld [vmem:[%s4413_s21] sm:$0xff]  ;;  %867 = vmatpush.bf16.msra.mxu2 %v3195_v58  ;;  %s4386_s29 = smov 48   ;;  %s4389_s23 = smov 16  }
  0x27   : > { %754 = vmatpush.bf16.msra.mxu1 %v3192_v3  ;;  %v653_v19 = vld [vmem:[%s4415_s3] sm:$0xff]  ;;  %s4387_s3 = smov 56  }
  0x28   : > { %v658_v11 = vpack.c.b16 %v656_v8, %v656_v8  ;;  %v657_v16 = vpack.c.b16 %v655_v14, %v655_v14  ;;  %v3280_v46 = vld [vmem:[%s4416_s20] ss:$0 sm:$0xff]  ;;  %s4391_s20 = smov 24  }
  0x29   : > { %v3299_v26 = vpop.eup %3298  ;;  %v3194_v59 = vld [vmem:[%s4361_s7] sm:$0xff] }
  0x2a   : > { %738 = vmatpush.bf16.msra.mxu0 %v3187_v4  ;;  %v769_v27 = vmul.f32 32.0, %v3299_v26  ;;  %vm773_vm2 = vweird.f32 %v3299_v26  ;;  %v3281_v49 = vld [vmem:[%s4417_s4] ss:$0 sm:$0xff]  ;;  %868 = vmatpush.bf16.msra.mxu2 %v3194_v59  ;;  %s3419_s4 = smov 120  }
  0x2b   : > { %755 = vmatpush.bf16.msra.mxu1 %v3191_v5  ;;  %v3282_v5 = vld [vmem:[%s4418_s5] ss:$0 sm:$0xff] }
  0x2c   : > { %v770_v28 = vsub.f32 1.0, %v769_v27  ;;  %v3283_v8 = vld [vmem:[%s4419_s6] ss:$0 sm:$0xff] }
  0x2e   : > { %739 = vmatpush.bf16.msra.mxu0 %v3186_v7  ;;  %v771_v29 = vmul.f32 %v3299_v26, %v770_v28 }
  0x2f   : > { %756 = vmatpush.bf16.msra.mxu1 %v3190_v9 }
  0x30   : > { %v772_v30 = vadd.f32 %v3299_v26, %v771_v29 }
  0x32   : > { %740 = vmatpush.bf16.msra.mxu0 %v3185_v10  ;;  %2997 = vmatmul.msk.bf16.vlgmr.msra.gmra.mxu1 %vm732_vm0, %v658_v11  ;;  %v3631_v31 = vsel %vm773_vm2, %v3299_v26, %v772_v30 }
  0x36   : > { %741 = vmatpush.bf16.msra.mxu0 %v3184_v12  ;;  %v3284_v12 = vld [vmem:[%s4362_s8] ss:$0 sm:$0xff] }
  0x3a   : > { %742 = vmatpush.bf16.msra.mxu0 %v3183_v13 }
  0x3e   : > { %743 = vmatpush.bf16.msra.mxu0 %v3182_v15 }
  0x41   : > { %744 = vmatmul.bf16.vlgmr.msra.gmra.mxu0 %v657_v16 }
  0xaf   : > { %v758_v17 = vpop.f32.mrf.mxu1 }
  0xb7   : > { %v760_v18 = vpop.f32.mrf.mxu1 }
  0xb8   : > { %v3425_v18 = vmov 1983009808  }
  0xbe   : > { %v745_v20 = vpop.f32.mrf.mxu0 }
  0xbf   : > { %v746_v21 = vadd.f32 %v745_v20, %v653_v19  ;;  %v914_v19 = vunpack.c.l.s4 %v3425_v18 }
  0xc1   : > { %v759_v22 = vadd.f32 %v758_v17, %v746_v21 }
  0xc3   : > { %v765_v23 = vsel %vm764_vm1, %v759_v22, 0.0 }
  0xc4   : > { %766 = vadd.xlane.f32.xlu0 %v765_v23  ;;  %v3684_v23 = vunpack.c.0.s8 %v914_v19 }
  0xc6   : > { %v747_v24 = vpop.f32.mrf.mxu0 }
 0x137   : > { %v767_v32 = vpop.xlane.xlu0 %766 }
 0x138   : > { %v775_v33 = vmul.f32 %v3631_v31, %v767_v32 }
 0x13a   : > { %v776_v34 = vsub.f32 %v759_v22, %v775_v33 }
 0x13c   : > { %v777_v35 = vmul.f32 %v776_v34, %v776_v34 }
 0x13e   : > { %v778_v36 = vsel %vm764_vm1, %v777_v35, 0.0 }
 0x13f   : > { %779 = vadd.xlane.f32.xlu0 %v778_v36  ;;  %v3426_v36 = vmov 1934713408  }
 0x1b2   : > { %v780_v37 = vpop.xlane.xlu0 %779 }
 0x1b3   : > { %v781_v38 = vmul.f32 %v780_v37, %v3631_v31  ;;  %v962_v37 = vunpack.c.l.s4 %v3426_v36 }
 0x1b5   : > { %v782_v39 = vadd.f32 1e-05, %v781_v38 }
 0x1b7   : > { %3300 = vrsqrt.f32 %v782_v39  ;;  %vm789_vm4 = vweird.f32 %v782_v39 }
 0x1bd   : > { %v3301_v40 = vpop.eup %3300 }
 0x1be   : > { %v784_v41 = vmul.f32 %v3301_v40, %v782_v39  ;;  %vm790_vm3 = vweird.f32 %v3301_v40 }
 0x1bf   : > { %vm791_vm5 = vmor %vm789_vm4, %vm790_vm3 }
 0x1c0   : > { %v785_v42 = vmul.f32 %v3301_v40, %v784_v41 }
 0x1c2   : > { %v786_v43 = vmul.f32 0.5, %v785_v42 }
 0x1c4   : > { %v787_v44 = vsub.f32 1.5, %v786_v43 }
 0x1c6   : > { %v788_v45 = vmul.f32 %v3301_v40, %v787_v44 }
 0x1c8   : > { %v792_v47 = vsel %vm791_vm5, %v3301_v40, %v788_v45 }
 0x1c9   : > { %v793_v48 = vmul.f32 %v792_v47, %v776_v34 }
 0x1cb   : > { %v797_v50 = vmul.f32 %v3280_v46, %v793_v48  ;;  %v3697_v46 = vunpack.c.0.s8 %v962_v37 }
 0x1cd   : > { %v3642_v51 = vadd.f32 %v3281_v49, %v797_v50 }
 0x1cf   : > { %v807_v52 = vsel %vm764_vm1, %v3642_v51, 0.0 }
 0x1d0   : > { %808 = vadd.xlane.f32.xlu1 %v807_v52 }
 0x243   : > { %v809_v53 = vpop.xlane.xlu1 %808 }
 0x244   : > { %v810_v54 = vmul.f32 %v809_v53, %v3631_v31 }
 0x246   : > { %v811_v55 = vsub.f32 %v3642_v51, %v810_v54 }
 0x248   : > { %v812_v56 = vmul.f32 %v811_v55, %v811_v55 }
 0x24a   : > { %v813_v57 = vsel %vm764_vm1, %v812_v56, 0.0 }
 0x24b   : > { %814 = vadd.xlane.f32.xlu1 %v813_v57 }
 0x2be   : > { %v815_v60 = vpop.xlane.xlu1 %814 }
 0x2bf   : > { %v816_v61 = vmul.f32 %v815_v60, %v3631_v31 }
 0x2c1   : > { %v817_v62 = vadd.f32 1e-05, %v816_v61 }
 0x2c3   : > { %3302 = vrsqrt.f32 %v817_v62  ;;  %vm824_vm7 = vweird.f32 %v817_v62 }
 0x2c9   : > { %v3303_v63 = vpop.eup %3302 }
 0x2ca   : > { %v819_v0 = vmul.f32 %v3303_v63, %v817_v62  ;;  %vm825_vm6 = vweird.f32 %v3303_v63 }
 0x2cb   : > { %vm826_vm8 = vmor %vm824_vm7, %vm825_vm6 }
 0x2cc   : > { %v820_v1 = vmul.f32 %v3303_v63, %v819_v0 }
 0x2ce   : > { %v821_v2 = vmul.f32 0.5, %v820_v1 }
 0x2d0   : > { %v822_v3 = vsub.f32 1.5, %v821_v2 }
 0x2d2   : > { %v823_v4 = vmul.f32 %v3303_v63, %v822_v3 }
 0x2d4   : > { %v827_v6 = vsel %vm826_vm8, %v3303_v63, %v823_v4 }
 0x2d5   : > { %v828_v7 = vmul.f32 %v827_v6, %v811_v55 }
 0x2d7   : > { %v832_v9 = vmul.f32 %v3282_v5, %v828_v7 }
 0x2d9   : > { %v836_v10 = vadd.f32 %v3283_v8, %v832_v9 }
 0x2db   : > { %v837_v11 = vpack.c.bf16 %v836_v10, %v836_v10 }
 0x2dd   : > { %3006 = vmatmul.msk.bf16.vlgmr.msra.gmra.mxu2 %vm764_vm1, %v837_v11 }
 0x360   : > { %v870_v13 = vpop.f32.mrf.mxu2 }
 0x361   : > { %v3666_v14 = vadd.f32 %v3284_v12, %v870_v13 }
 0x363   : > { %878 = vrot.lane.b32.xlu1 %v3666_v14, %s4393_s24  ;;  %887 = vrot.lane.b32.xlu0 %v3666_v14, %s3418_s1  ;;  %v911_v26 = vrot.slane %v3666_v14, 4  ;;  %s4427_s24 = smov 40  }
 0x364   : > { %875 = vrot.lane.b32.xlu2 %v3666_v14, %s3419_s4 }
 0x368   : > { %v872_v15 = vpop.f32.mrf.mxu2 }
 0x36c   : > { %881 = vrot.lane.b32.xlu2 %v3666_v14, %s3420_s30 }
 0x374   : > { %884 = vrot.lane.b32.xlu2 %v3666_v14, %s4394_s0  ;;  %s4429_s0 = smov 16  }
 0x37c   : > { %893 = vrot.lane.b32.xlu2 %v3666_v14, %s4392_s25  ;;  %s4422_s25 = smov 112  }
 0x384   : > { %890 = vrot.lane.b32.xlu2 %v3666_v14, %s4395_s26  ;;  %s4430_s26 = smov 8  }
 0x38c   : > { %896 = vrot.lane.b32.xlu2 %v3666_v14, %s4388_s28  ;;  %s4423_s28 = smov 72  }
 0x3be   : > { %v876_v16 = vpop.permute.xlu2 %875 }
 0x3bf   : > { %v923_v22 = vrot.slane %v876_v16, 4 }
 0x3c6   : > { %v882_v17 = vpop.permute.xlu2 %881 }
 0x3c7   : > { %v921_v21 = vrot.slane %v882_v17, 4  ;;  %v924_v24 = vsel %vm909_vm9, %v882_v17, %v923_v22 }
 0x3c8   : > { %v932_v29 = vperm.slane %v924_v24, %v3684_v23 }
 0x3c9   : > { %v922_v25 = vsel %vm909_vm9, %v921_v21, %v876_v16 }
 0x3ca   : > { %v928_v35 = vperm.slane %v922_v25, %v3684_v23  ;;  %v969_v43 = vrot.slane %v932_v29, 4 }
 0x3cc   : > { %v957_v45 = vrot.slane %v928_v35, 4 }
 0x3ce   : > { %v885_v20 = vpop.permute.xlu2 %884 }
 0x3cf   : > { %v935_v52 = vrot.slane %v885_v20, 4 }
 0x3d5   : > { %v879_v27 = vpop.permute.xlu1 %878  ;;  %v888_v28 = vpop.permute.xlu0 %887 }
 0x3d6   : > { %v908_v30 = vrot.slane %v879_v27, 4  ;;  %v912_v32 = vsel %vm909_vm9, %v879_v27, %v911_v26  ;;  %v947_v33 = vrot.slane %v888_v28, 4  ;;  %v894_v34 = vpop.permute.xlu2 %893 }
 0x3d7   : > { %v920_v38 = vperm.slane %v912_v32, %v3684_v23  ;;  %v945_v39 = vrot.slane %v894_v34, 4 }
 0x3d8   : > { %v910_v40 = vsel %vm909_vm9, %v908_v30, %v3666_v14  ;;  %v948_v42 = vsel %vm909_vm9, %v894_v34, %v947_v33 }
 0x3d9   : > { %v916_v41 = vperm.slane %v910_v40, %v3684_v23  ;;  %v971_v44 = vrot.slane %v920_v38, 4  ;;  %v946_v47 = vsel %vm909_vm9, %v945_v39, %v888_v28  ;;  %v970_v49 = vsel %vm909_vm9, %v969_v43, %v920_v38 }
 0x3da   : > { %v956_v50 = vperm.slane %v948_v42, %v3684_v23  ;;  %v952_v55 = vperm.slane %v946_v47, %v3684_v23  ;;  %v976_v57 = vperm.slane %v970_v49, %v3697_v46 }
 0x3db   : > { %v959_v48 = vrot.slane %v916_v41, 4  ;;  %v958_v53 = vsel %vm909_vm9, %v957_v45, %v916_v41  ;;  %v972_v54 = vsel %vm909_vm9, %v932_v29, %v971_v44 }
 0x3dc   : > { %v964_v61 = vperm.slane %v958_v53, %v3697_v46  ;;  %v993_v62 = vrot.slane %v956_v50, 4  ;;  %v980_v0 = vperm.slane %v972_v54, %v3697_v46  ;;  %v981_v2 = vrot.slane %v952_v55, 4 }
 0x3dd   : > { %v960_v60 = vsel %vm909_vm9, %v928_v35, %v959_v48  ;;  %v1015_v7 = vrot.slane %v976_v57, 4 }
 0x3de   : > { %v891_v56 = vpop.permute.xlu2 %890  ;;  %v968_v6 = vperm.slane %v960_v60, %v3697_v46  ;;  %v1007_v9 = vrot.slane %v964_v61, 4  ;;  %v1019_v18 = vrot.slane %v980_v0, 4 }
 0x3df   : > { %v933_v58 = vrot.slane %v891_v56, 4  ;;  %v936_v59 = vsel %vm909_vm9, %v891_v56, %v935_v52 }
 0x3e0   : > { %v944_v63 = vperm.slane %v936_v59, %v3684_v23  ;;  %v1011_v26 = vrot.slane %v968_v6, 4 }
 0x3e1   : > { %v934_v1 = vsel %vm909_vm9, %v933_v58, %v885_v20 }
 0x3e2   : > { %v940_v3 = vperm.slane %v934_v1, %v3684_v23  ;;  %v994_v4 = vsel %vm909_vm9, %v993_v62, %v944_v63  ;;  %v995_v5 = vrot.slane %v944_v63, 4 }
 0x3e3   : > { %v1000_v8 = vperm.slane %v994_v4, %v3697_v46 }
 0x3e4   : > { %v982_v10 = vsel %vm909_vm9, %v981_v2, %v940_v3  ;;  %v983_v11 = vrot.slane %v940_v3, 4  ;;  %v996_v12 = vsel %vm909_vm9, %v956_v50, %v995_v5 }
 0x3e5   : > { %v988_v13 = vperm.slane %v982_v10, %v3697_v46  ;;  %v1004_v15 = vperm.slane %v996_v12, %v3697_v46  ;;  %v1013_v16 = vrot.slane %v1000_v8, 4  ;;  %v1016_v17 = vsel %vm909_vm9, %v1000_v8, %v1015_v7 }
 0x3e6   : > { %v984_v19 = vsel %vm909_vm9, %v952_v55, %v983_v11  ;;  %v1115_v20 = vrot.slane %v1016_v17, 4 }
 0x3e7   : > { %v992_v21 = vperm.slane %v984_v19, %v3697_v46  ;;  %v1005_v22 = vrot.slane %v988_v13, 4  ;;  %v1008_v24 = vsel %vm909_vm9, %v988_v13, %v1007_v9  ;;  %v1014_v25 = vsel %vm909_vm9, %v1013_v16, %v976_v57 }
 0x3e8   : > { %v1017_v27 = vrot.slane %v1004_v15, 4  ;;  %v1020_v28 = vsel %vm909_vm9, %v1004_v15, %v1019_v18  ;;  %v1091_v29 = vrot.slane %v1008_v24, 4  ;;  %v1103_v32 = vrot.slane %v1014_v25, 4 }
 0x3e9   : > { %v1009_v30 = vrot.slane %v992_v21, 4  ;;  %v1113_v33 = vrot.slane %v1020_v28, 4  ;;  %v1006_v34 = vsel %vm909_vm9, %v1005_v22, %v964_v61  ;;  %v1012_v36 = vsel %vm909_vm9, %v992_v21, %v1011_v26 }
 0x3ea   : > { %v1018_v35 = vsel %vm909_vm9, %v1017_v27, %v980_v0  ;;  %v1079_v37 = vrot.slane %v1006_v34, 4  ;;  %v1116_v38 = vsel %vm909_vm9, %v1020_v28, %v1115_v20  ;;  %v1089_v42 = vrot.slane %v1012_v36, 4 }
 0x3eb   : > { %v1101_v39 = vrot.slane %v1018_v35, 4  ;;  %v1114_v40 = vsel %vm909_vm9, %v1113_v33, %v1016_v17  ;;  %v1010_v41 = vsel %vm909_vm9, %v1009_v30, %v968_v6  ;;  %v1092_v47 = vsel %vm909_vm9, %v1012_v36, %v1091_v29 }
 0x3ec   : > { %v3733_v43 = vperm.slane %v1114_v40, %v3684_v23  ;;  %v1077_v44 = vrot.slane %v1010_v41, 4  ;;  %v1080_v45 = vsel %vm909_vm9, %v1010_v41, %v1079_v37  ;;  %v1100_v50 = vperm.slane %v1092_v47, %v3684_v23 }
 0x3ed   : > { %v1102_v48 = vsel %vm909_vm9, %v1101_v39, %v1014_v25  ;;  %v1088_v49 = vperm.slane %v1080_v45, %v3684_v23  ;;  %v1104_v52 = vsel %vm909_vm9, %v1018_v35, %v1103_v32  ;;  %v1124_v54 = vperm.slane %v1116_v38, %v3684_v23 }
 0x3ee   : > { %v1112_v53 = vperm.slane %v1104_v52, %v3684_v23  ;;  %v1078_v55 = vsel %vm909_vm9, %v1077_v44, %v1006_v34  ;;  %v1090_v56 = vsel %vm909_vm9, %v1089_v42, %v1008_v24  ;;  %v1137_v57 = vrot.slane %v1100_v50, 4 }
 0x3ef   : > { %v1139_v58 = vrot.slane %v1088_v49, 4  ;;  %v1084_v59 = vperm.slane %v1078_v55, %v3684_v23  ;;  %v1096_v60 = vperm.slane %v1090_v56, %v3684_v23  ;;  %v1161_v61 = vrot.slane %v1124_v54, 4 }
 0x3f0   : > { %v1163_v62 = vrot.slane %v1112_v53, 4  ;;  %v1108_v63 = vperm.slane %v1102_v48, %v3684_v23  ;;  %v1149_v0 = vrot.slane %v3733_v43, 4  ;;  %v1138_v1 = vsel %vm909_vm9, %v1137_v57, %v1088_v49 }
 0x3f1   : > { %v1140_v2 = vsel %vm909_vm9, %v1100_v50, %v1139_v58  ;;  %v1125_v3 = vrot.slane %v1096_v60, 4  ;;  %v1144_v4 = vperm.slane %v1138_v1, %v3697_v46  ;;  %v1162_v5 = vsel %vm909_vm9, %v1161_v61, %v1112_v53 }
 0x3f2   : > { %v1148_v6 = vperm.slane %v1140_v2, %v3697_v46  ;;  %v1164_v7 = vsel %vm909_vm9, %v1124_v54, %v1163_v62  ;;  %v1168_v8 = vperm.slane %v1162_v5, %v3697_v46  ;;  %v1150_v11 = vsel %vm909_vm9, %v1149_v0, %v1108_v63 }
 0x3f3   : > { %v1172_v9 = vperm.slane %v1164_v7, %v3697_v46  ;;  %v1126_v10 = vsel %vm909_vm9, %v1125_v3, %v1084_v59  ;;  %v1183_v12 = vrot.slane %v1144_v4, 4  ;;  %v1156_v17 = vperm.slane %v1150_v11, %v3697_v46  ;;  %v897_v11 = vpop.permute.xlu2 %896 }
 0x3f4   : > { %v1132_v13 = vperm.slane %v1126_v10, %v3697_v46  ;;  %v1181_v15 = vrot.slane %v1168_v8, 4  ;;  %v1187_v22 = vrot.slane %v1148_v6, 4  ;;  %v1151_v35 = vrot.slane %v1108_v63, 4 }
 0x3f5   : > { %v1185_v16 = vrot.slane %v1172_v9, 4  ;;  %v1184_v18 = vsel %vm909_vm9, %v1168_v8, %v1183_v12  ;;  %v1173_v28 = vrot.slane %v1156_v17, 4  ;;  %v1127_v39 = vrot.slane %v1084_v59, 4 }
 0x3f6   : > { %v1182_v19 = vsel %vm909_vm9, %v1181_v15, %v1144_v4  ;;  %v1248_v20 = vpack.c.bf16 %v1184_v18, %v1184_v18  ;;  %v1175_v26 = vrot.slane %v1132_v13, 4  ;;  %v1188_v32 = vsel %vm909_vm9, %v1172_v9, %v1187_v22 }
 0x3f7   : > { %v1186_v21 = vsel %vm909_vm9, %v1185_v16, %v1148_v6  ;;  %v1247_v24 = vpack.c.bf16 %v1182_v19, %v1182_v19  ;;  %v1174_v34 = vsel %vm909_vm9, %v1173_v28, %v1132_v13  ;;  %v1250_v36 = vpack.c.bf16 %v1188_v32, %v1188_v32 }
 0x3f8   : > { %v1249_v25 = vpack.c.bf16 %v1186_v21, %v1186_v21  ;;  %v1279_v27 = vsel %vm1255_vm10, %v1248_v20, 0  ;;  %v1176_v33 = vsel %vm909_vm9, %v1156_v17, %v1175_v26  ;;  %v1243_v38 = vpack.c.bf16 %v1174_v34, %v1174_v34 }
 0x3f9   : > { %v1260_v29 = vsel %vm1255_vm10, %v1247_v24, 0  ;;  %1288 = vmatpush.bf16.xpose.msrb.mxu2 %v1279_v27  ;;  %v1244_v37 = vpack.c.bf16 %v1176_v33, %v1176_v33  ;;  %v1317_v40 = vsel %vm1255_vm10, %v1250_v36, 0  ;;  %v1152_v41 = vsel %vm909_vm9, %v3733_v43, %v1151_v35 }
 0x3fa   : > { %v1298_v30 = vsel %vm1255_vm10, %v1249_v25, 0  ;;  %1269 = vmatpush.bf16.xpose.msra.mxu3 %v1260_v29  ;;  %v1160_v42 = vperm.slane %v1152_v41, %v3697_v46  ;;  %v1128_v44 = vsel %vm909_vm9, %v1096_v60, %v1127_v39  ;;  %v802_v43 = vlaneseq }
 0x3fb   : > { %v1136_v45 = vperm.slane %v1128_v44, %v3697_v46  ;;  %v1023_v41 = vrot.slane %v897_v11, 4 }
 0x3fc   : > { %v1177_v47 = vrot.slane %v1160_v42, 4  ;;  %v3782_v54 = vand.u32 127, %v802_v43 }
 0x3fd   : > { %v1179_v50 = vrot.slane %v1136_v45, 4 }
 0x3fe   : > { %v1178_v48 = vsel %vm909_vm9, %v1177_v47, %v1136_v45  ;;  %vm804_vm11 = vcmp.lt.s32.totalorder %v3782_v54, 5 }
 0x3ff   : > { %v1245_v49 = vpack.c.bf16 %v1178_v48, %v1178_v48  ;;  %v1180_v52 = vsel %vm909_vm9, %v1160_v42, %v1179_v50 }
 0x400   : > { %3008 = vmatmul.msk.bf16.vlgmr.msrb.gmra.mxu2 %vm1255_vm10, %v1244_v37  ;;  %v1246_v53 = vpack.c.bf16 %v1180_v52, %v1180_v52 }
 0x401   : > { %3007 = vmatmul.msk.bf16.vlgmr.msra.gmra.mxu3 %vm1255_vm10, %v1243_v38 }
 0x402   : > { %1307 = vmatpush.bf16.xpose.msrb.mxu3 %v1298_v30 }
 0x40a   : > { %1326 = vmatpush.bf16.xpose.msra.mxu3 %v1317_v40 }
 0x411   : > { %3009 = vmatmul.msk.bf16.vlgmr.msrb.gmra.mxu3 %vm1255_vm10, %v1245_v49 }
 0x421   : > { %3010 = vmatmul.msk.bf16.vlgmr.msra.gmra.mxu3 %vm1255_vm10, %v1246_v53 }
 0x483   : > { %v1290_v55 = vpop.f32.mrf.mxu2 }
 0x484   : > { %v1271_v56 = vpop.f32.mrf.mxu3  ;;  %v1333_v57 = vmul.f32 0.35355338, %v1290_v55 }
 0x485   : > { %v1332_v58 = vmul.f32 0.35355338, %v1271_v56 }
 0x486   : > { %v1339_v59 = vsel %vm804_vm11, %v1333_v57, -1e+09 }
 0x487   : > { %v1338_v60 = vsel %vm804_vm11, %v1332_v58, -1e+09  ;;  %v1345_v61 = vsel %vm1255_vm10, %v1339_v59, -inf }
 0x488   : > { %v1342_v62 = vsel %vm1255_vm10, %v1338_v60, -inf  ;;  %1346 = vmax.xlane.f32.xlu2 %v1345_v61 }
 0x489   : > { %1343 = vmax.xlane.f32.xlu0 %v1342_v62 }
 0x48b   : > { %v1292_v63 = vpop.f32.mrf.mxu2 }
 0x48c   : > { %v1273_v0 = vpop.f32.mrf.mxu3 }
 0x494   : > { %v1309_v1 = vpop.f32.mrf.mxu3 }
 0x495   : > { %v1334_v2 = vmul.f32 0.35355338, %v1309_v1 }
 0x497   : > { %v1340_v3 = vsel %vm804_vm11, %v1334_v2, -1e+09 }
 0x498   : > { %v1348_v4 = vsel %vm1255_vm10, %v1340_v3, -inf }
 0x499   : > { %1349 = vmax.xlane.f32.xlu1 %v1348_v4 }
 0x49c   : > { %v1311_v5 = vpop.f32.mrf.mxu3 }
 0x4a0   : > { %905 = vrot.lane.b32.xlu2 %v3666_v14, %s4385_s27  ;;  %s4390_s27 = smov 8  }
 0x4a4   : > { %v1328_v6 = vpop.f32.mrf.mxu3 }
 0x4a5   : > { %v1335_v7 = vmul.f32 0.35355338, %v1328_v6 }
 0x4a7   : > { %v1341_v8 = vsel %vm804_vm11, %v1335_v7, -1e+09 }
 0x4a8   : > { %v1351_v9 = vsel %vm1255_vm10, %v1341_v8, -inf }
 0x4a9   : > { %1352 = vmax.xlane.f32.xlu0 %v1351_v9 }
 0x4ac   : > { %v1330_v10 = vpop.f32.mrf.mxu3 }
 0x4b2   : > { %899 = vrot.lane.b32.xlu1 %v3666_v14, %s4387_s3 }
 0x4bd   : > { %902 = vrot.lane.b32.xlu0 %v3666_v14, %s4386_s29 }
 0x4fb   : > { %v1347_v12 = vpop.xlane.xlu2 %1346 }
 0x4fc   : > { %v1344_v13 = vpop.xlane.xlu0 %1343  ;;  %v1355_v15 = vsub.f32 %v1339_v59, %v1347_v12 }
 0x4fd   : > { %v1354_v16 = vsub.f32 %v1338_v60, %v1344_v13 }
 0x4fe   : > { %v1360_v17 = vmul.f32 1.442695, %v1355_v15 }
 0x4ff   : > { %v1358_v18 = vmul.f32 1.442695, %v1354_v16 }
 0x500   : > { %3304 = vpow2.f32 %v1360_v17 }
 0x501   : > { %3306 = vpow2.f32 %v1358_v18 }
 0x503   : > { %v906_v35 = vpop.permute.xlu2 %905 }
 0x504   : > { %v1033_v37 = vrot.slane %v906_v35, 4 }
 0x506   : > { %v3803_v19 = vpop.eup %3304 }
 0x507   : > { %v3805_v20 = vpop.eup %3306  ;;  %v1369_v21 = vsel %vm1255_vm10, %v3803_v19, 0.0 }
 0x508   : > { %v1366_v22 = vsel %vm1255_vm10, %v3805_v20, 0.0  ;;  %1370 = vadd.xlane.f32.xlu1 %v1369_v21 }
 0x509   : > { %1367 = vadd.xlane.f32.xlu0 %v1366_v22 }
 0x50c   : > { %v1350_v14 = vpop.xlane.xlu1 %1349 }
 0x50d   : > { %v1356_v24 = vsub.f32 %v1340_v3, %v1350_v14 }
 0x50f   : > { %v1362_v25 = vmul.f32 1.442695, %v1356_v24 }
 0x511   : > { %3308 = vpow2.f32 %v1362_v25 }
 0x517   : > { %v3811_v26 = vpop.eup %3308 }
 0x518   : > { %v1372_v27 = vsel %vm1255_vm10, %v3811_v26, 0.0 }
 0x519   : > { %1373 = vadd.xlane.f32.xlu2 %v1372_v27 }
 0x51c   : > { %v1353_v28 = vpop.xlane.xlu0 %1352 }
 0x51d   : > { %v1357_v29 = vsub.f32 %v1341_v8, %v1353_v28 }
 0x51f   : > { %v1364_v30 = vmul.f32 1.442695, %v1357_v29 }
 0x521   : > { %3310 = vpow2.f32 %v1364_v30 }
 0x524   : > { %v900_v32 = vpop.permute.xlu1 %899 }
 0x525   : > { %v1035_v33 = vrot.slane %v900_v32, 4  ;;  %v1034_v39 = vsel %vm909_vm9, %v1033_v37, %v900_v32 }
 0x526   : > { %v1040_v42 = vperm.slane %v1034_v39, %v3684_v23 }
 0x527   : > { %v3815_v34 = vpop.eup %3310  ;;  %v1036_v38 = vsel %vm909_vm9, %v906_v35, %v1035_v33 }
 0x528   : > { %v1375_v36 = vsel %vm1255_vm10, %v3815_v34, 0.0  ;;  %v1044_v40 = vperm.slane %v1036_v38, %v3684_v23  ;;  %v1045_v52 = vrot.slane %v1040_v42, 4 }
 0x529   : > { %1376 = vadd.xlane.f32.xlu0 %v1375_v36 }
 0x52a   : > { %v1057_v48 = vrot.slane %v1044_v40, 4 }
 0x52f   : > { %v903_v44 = vpop.permute.xlu0 %902 }
 0x530   : > { %v1021_v45 = vrot.slane %v903_v44, 4  ;;  %v1024_v47 = vsel %vm909_vm9, %v903_v44, %v1023_v41 }
 0x531   : > { %v1032_v49 = vperm.slane %v1024_v47, %v3684_v23 }
 0x532   : > { %v1022_v50 = vsel %vm909_vm9, %v1021_v45, %v897_v11 }
 0x533   : > { %v1028_v53 = vperm.slane %v1022_v50, %v3684_v23  ;;  %v1058_v43 = vsel %vm909_vm9, %v1057_v48, %v1032_v49  ;;  %v1059_v55 = vrot.slane %v1032_v49, 4 }
 0x534   : > { %v1064_v56 = vperm.slane %v1058_v43, %v3697_v46 }
 0x535   : > { %v1046_v57 = vsel %vm909_vm9, %v1045_v52, %v1028_v53  ;;  %v1047_v58 = vrot.slane %v1028_v53, 4  ;;  %v1060_v59 = vsel %vm909_vm9, %v1044_v40, %v1059_v55 }
 0x536   : > { %v1052_v60 = vperm.slane %v1046_v57, %v3697_v46  ;;  %v1068_v61 = vperm.slane %v1060_v59, %v3697_v46  ;;  %v1073_v0 = vrot.slane %v1064_v56, 4 }
 0x537   : > { %v1048_v62 = vsel %vm909_vm9, %v1040_v42, %v1047_v58 }
 0x538   : > { %v1056_v63 = vperm.slane %v1048_v62, %v3697_v46  ;;  %v1075_v1 = vrot.slane %v1068_v61, 4  ;;  %v1069_v2 = vrot.slane %v1052_v60, 4  ;;  %v1074_v9 = vsel %vm909_vm9, 0.0, %v1073_v0 }
 0x53a   : > { %v1071_v3 = vrot.slane %v1056_v63, 4  ;;  %v1076_v4 = vsel %vm909_vm9, 0.0, %v1075_v1  ;;  %v1200_v5 = vsel %vm909_vm9, %v1075_v1, %v1064_v56  ;;  %v1070_v16 = vsel %vm909_vm9, 0.0, %v1069_v2 }
 0x53b   : > { %v1204_v6 = vperm.slane %v1200_v5, %v3684_v23  ;;  %v1205_v7 = vrot.slane %v1076_v4, 4 }
 0x53c   : > { %v1072_v8 = vsel %vm909_vm9, 0.0, %v1071_v3  ;;  %v1189_v10 = vsel %vm909_vm9, %v1071_v3, %v1052_v60 }
 0x53d   : > { %v1194_v11 = vrot.slane %v1072_v8, 4  ;;  %v1206_v12 = vsel %vm909_vm9, %v1205_v7, %v1074_v9  ;;  %v1193_v13 = vperm.slane %v1189_v10, %v3684_v23  ;;  %v1225_v15 = vrot.slane %v1204_v6, 4 }
 0x53e   : > { %v1210_v17 = vperm.slane %v1206_v12, %v3684_v23 }
 0x53f   : > { %v1195_v18 = vsel %vm909_vm9, %v1194_v11, %v1070_v16  ;;  %v1213_v21 = vrot.slane %v1193_v13, 4 }
 0x540   : > { %v1199_v22 = vperm.slane %v1195_v18, %v3684_v23  ;;  %v1223_v14 = vrot.slane %v1210_v17, 4  ;;  %v1226_v24 = vsel %vm909_vm9, %v1210_v17, %v1225_v15 }
 0x541   : > { %v1234_v25 = vperm.slane %v1226_v24, %v3697_v46 }
 0x542   : > { %v1211_v27 = vrot.slane %v1199_v22, 4  ;;  %v1214_v28 = vsel %vm909_vm9, %v1199_v22, %v1213_v21  ;;  %v1224_v29 = vsel %vm909_vm9, %v1223_v14, %v1204_v6 }
 0x543   : > { %v1222_v30 = vperm.slane %v1214_v28, %v3697_v46  ;;  %v1239_v32 = vrot.slane %v1234_v25, 4  ;;  %v1230_v33 = vperm.slane %v1224_v29, %v3697_v46 }
 0x544   : > { %v1212_v35 = vsel %vm909_vm9, %v1211_v27, %v1193_v13 }
 0x545   : > { %v1240_v36 = vsel %vm909_vm9, %v1239_v32, %v1222_v30  ;;  %v1218_v37 = vperm.slane %v1212_v35, %v3697_v46  ;;  %v1235_v38 = vrot.slane %v1230_v33, 4  ;;  %v1241_v39 = vrot.slane %v1222_v30, 4 }
 0x546   : > { %v1253_v40 = vpack.c.bf16 %v1240_v36, %v1240_v36 }
 0x547   : > { %v1236_v41 = vsel %vm909_vm9, %v1235_v38, %v1218_v37  ;;  %v1242_v42 = vsel %vm909_vm9, %v1234_v25, %v1241_v39  ;;  %v1237_v44 = vrot.slane %v1218_v37, 4 }
 0x548   : > { %v1433_v45 = vsel %vm1393_vm12, %v1253_v40, 0  ;;  %v1251_v47 = vpack.c.bf16 %v1236_v41, %v1236_v41  ;;  %v1254_v48 = vpack.c.bf16 %v1242_v42, %v1242_v42 }
 0x549   : > { %1442 = vmatpush.bf16.msrb.mxu0 %v1433_v45  ;;  %v1238_v49 = vsel %vm909_vm9, %v1230_v33, %v1237_v44 }
 0x54a   : > { %v1395_v50 = vsel %vm1393_vm12, %v1251_v47, 0  ;;  %v1452_v52 = vsel %vm1393_vm12, %v1254_v48, 0  ;;  %v1252_v53 = vpack.c.bf16 %v1238_v49, %v1238_v49 }
 0x54b   : > { %1404 = vmatpush.bf16.msra.mxu2 %v1395_v50  ;;  %1461 = vmatpush.bf16.msrb.mxu1 %v1452_v52 }
 0x54c   : > { %v1414_v43 = vsel %vm1393_vm12, %v1252_v53, 0 }
 0x54d   : > { %1423 = vmatpush.bf16.msrb.mxu3 %v1414_v43 }
 0x57b   : > { %v1371_v55 = vpop.xlane.xlu1 %1370 }
 0x57c   : > { %v1368_v56 = vpop.xlane.xlu0 %1367  ;;  %3312 = vrcp.f32 %v1371_v55 }
 0x57d   : > { %3314 = vrcp.f32 %v1368_v56 }
 0x582   : > { %v3313_v57 = vpop.eup %3312 }
 0x583   : > { %v3315_v58 = vpop.eup %3314  ;;  %v1383_v59 = vmul.f32 %v3313_v57, %v3803_v19 }
 0x584   : > { %v1382_v60 = vmul.f32 %v3315_v58, %v3805_v20 }
 0x585   : > { %v1387_v61 = vpack.c.bf16 %v1383_v59, %v1383_v59 }
 0x586   : > { %v1386_v62 = vpack.c.bf16 %v1382_v60, %v1382_v60 }
 0x587   : > { %3012 = vmatmul.msk.bf16.vlgmr.msrb.gmra.mxu3 %vm1255_vm10, %v1387_v61 }
 0x588   : > { %3011 = vmatmul.msk.bf16.vlgmr.msra.gmra.mxu2 %vm1255_vm10, %v1386_v62 }
 0x58c   : > { %v1374_v63 = vpop.xlane.xlu2 %1373 }
 0x58d   : > { %3316 = vrcp.f32 %v1374_v63 }
 0x593   : > { %v3317_v0 = vpop.eup %3316 }
 0x594   : > { %v1384_v1 = vmul.f32 %v3317_v0, %v3811_v26 }
 0x596   : > { %v1388_v2 = vpack.c.bf16 %v1384_v1, %v1384_v1 }
 0x598   : > { %3013 = vmatmul.msk.bf16.vlgmr.msrb.gmra.mxu0 %vm1255_vm10, %v1388_v2 }
 0x59c   : > { %v1377_v3 = vpop.xlane.xlu0 %1376 }
 0x59d   : > { %3318 = vrcp.f32 %v1377_v3 }
 0x5a3   : > { %v3319_v4 = vpop.eup %3318 }
 0x5a4   : > { %v1385_v19 = vmul.f32 %v3319_v4, %v3815_v34 }
 0x5a6   : > { %v1389_v20 = vpack.c.bf16 %v1385_v19, %v1385_v19 }
 0x5a8   : > { %3014 = vmatmul.msk.bf16.vlgmr.msrb.gmra.mxu1 %vm1255_vm10, %v1389_v20 }
 0x60a   : > { %v1425_v5 = vpop.f32.mrf.mxu3 }
 0x60b   : > { %v1406_v6 = vpop.f32.mrf.mxu2  ;;  %v1481_v16 = vrot.slane %v1425_v5, 4 }
 0x60c   : > { %v1469_v11 = vrot.slane %v1406_v6, 4 }
 0x612   : > { %v1427_v7 = vpop.f32.mrf.mxu3 }
 0x613   : > { %v1408_v8 = vpop.f32.mrf.mxu2 }
 0x615   : > { %v1444_v9 = vpop.f32.mrf.mxu0 }
 0x616   : > { %v1467_v12 = vrot.slane %v1444_v9, 4  ;;  %v1470_v26 = vsel %vm909_vm9, %v1444_v9, %v1469_v11 }
 0x617   : > { %v1478_v15 = vperm.slane %v1470_v26, %v3684_v23 }
 0x618   : > { %v1468_v13 = vsel %vm909_vm9, %v1467_v12, %v1406_v6 }
 0x619   : > { %v1474_v34 = vperm.slane %v1468_v13, %v3684_v23  ;;  %v1505_v22 = vrot.slane %v1478_v15, 4 }
 0x61b   : > { %v1493_v25 = vrot.slane %v1474_v34, 4 }
 0x61d   : > { %v1446_v10 = vpop.f32.mrf.mxu0 }
 0x625   : > { %v1463_v17 = vpop.f32.mrf.mxu1 }
 0x626   : > { %v1479_v18 = vrot.slane %v1463_v17, 4  ;;  %v1482_v21 = vsel %vm909_vm9, %v1463_v17, %v1481_v16  ;;  %v3197_v16 = vld [vmem:[%s4363_s9 + $0x8] sm:$0xff] }
 0x627   : > { %v1490_v14 = vperm.slane %v1482_v21, %v3684_v23  ;;  %1620 = vmatpush.bf16.msrb.mxu2 %v3197_v16 }
 0x628   : > { %v1480_v24 = vsel %vm909_vm9, %v1479_v18, %v1425_v5 }
 0x629   : > { %v1486_v27 = vperm.slane %v1480_v24, %v3684_v23  ;;  %v1503_v28 = vrot.slane %v1490_v14, 4  ;;  %v1506_v29 = vsel %vm909_vm9, %v1490_v14, %v1505_v22 }
 0x62a   : > { %v1514_v30 = vperm.slane %v1506_v29, %v3697_v46 }
 0x62b   : > { %v1491_v32 = vrot.slane %v1486_v27, 4  ;;  %v1494_v33 = vsel %vm909_vm9, %v1486_v27, %v1493_v25  ;;  %v1504_v35 = vsel %vm909_vm9, %v1503_v28, %v1478_v15  ;;  %v3285_v27 = vld [vmem:[%s4364_s10] ss:$0 sm:$0xff] }
 0x62c   : > { %v1502_v36 = vperm.slane %v1494_v33, %v3697_v46  ;;  %v1510_v37 = vperm.slane %v1504_v35, %v3697_v46  ;;  %v1521_v38 = vrot.slane %v1514_v30, 4 }
 0x62d   : > { %v1492_v39 = vsel %vm909_vm9, %v1491_v32, %v1474_v34  ;;  %v1465_v40 = vpop.f32.mrf.mxu1  ;;  %v3196_v34 = vld [vmem:[%s4363_s9] sm:$0xff] }
 0x62e   : > { %v1498_v41 = vperm.slane %v1492_v39, %v3697_v46  ;;  %v1517_v42 = vrot.slane %v1502_v36, 4  ;;  %v1519_v44 = vrot.slane %v1510_v37, 4  ;;  %v1522_v45 = vsel %vm909_vm9, 0.0, %v1521_v38  ;;  %1621 = vmatpush.bf16.msrb.mxu2 %v3196_v34  ;;  %v3198_v40 = vld [vmem:[%s4367_s13] sm:$0xff] }
 0x62f   : > { %v1534_v47 = vsel %vm909_vm9, %v1521_v38, %v1510_v37  ;;  %v1539_v48 = vrot.slane %v1522_v45, 4 }
 0x630   : > { %v1515_v49 = vrot.slane %v1498_v41, 4  ;;  %v1518_v50 = vsel %vm909_vm9, 0.0, %v1517_v42  ;;  %v1520_v52 = vsel %vm909_vm9, 0.0, %v1519_v44  ;;  %v1538_v53 = vperm.slane %v1534_v47, %v3684_v23 }
 0x631   : > { %v1528_v43 = vrot.slane %v1518_v50, 4  ;;  %v1523_v55 = vsel %vm909_vm9, %v1517_v42, %v1498_v41  ;;  %v1540_v56 = vsel %vm909_vm9, %v1539_v48, %v1520_v52 }
 0x632   : > { %v1516_v57 = vsel %vm909_vm9, 0.0, %v1515_v49  ;;  %v1527_v58 = vperm.slane %v1523_v55, %v3684_v23  ;;  %v1544_v59 = vperm.slane %v1540_v56, %v3684_v23  ;;  %v1559_v60 = vrot.slane %v1538_v53, 4  ;;  %v3287_v56 = vld [vmem:[%s4366_s12] ss:$0 sm:$0xff] }
 0x633   : > { %v1529_v61 = vsel %vm909_vm9, %v1528_v43, %v1516_v57 }
 0x634   : > { %v1533_v62 = vperm.slane %v1529_v61, %v3684_v23  ;;  %v1547_v63 = vrot.slane %v1527_v58, 4  ;;  %v1560_v0 = vsel %vm909_vm9, %v1544_v59, %v1559_v60  ;;  %v1557_v1 = vrot.slane %v1544_v59, 4  ;;  %v3207_v60 = vld [vmem:[%s4369_s15 + $0x38] sm:$0xff]  ;;  %v3206_v61 = vld [vmem:[%s4369_s15 + $0x30] sm:$0xff] }
 0x635   : > { %v1568_v2 = vperm.slane %v1560_v0, %v3697_v46  ;;  %1788 = vmatpush.bf16.msra.mxu0 %v3207_v60  ;;  %v3203_v0 = vld [vmem:[%s4369_s15 + $0x18] sm:$0xff] }
 0x636   : > { %v1548_v3 = vsel %vm909_vm9, %v1533_v62, %v1547_v63  ;;  %v1545_v4 = vrot.slane %v1533_v62, 4  ;;  %v1558_v19 = vsel %vm909_vm9, %v1557_v1, %v1538_v53  ;;  %v3286_v53 = vld [vmem:[%s4365_s11] ss:$0 sm:$0xff]  ;;  %v3205_v62 = vld [vmem:[%s4369_s15 + $0x28] sm:$0xff]  ;;  %v3202_v1 = vld [vmem:[%s4369_s15 + $0x10] sm:$0xff] }
 0x637   : > { %v1556_v20 = vperm.slane %v1548_v3, %v3697_v46  ;;  %v1573_v5 = vrot.slane %v1568_v2, 4  ;;  %v1564_v6 = vperm.slane %v1558_v19, %v3697_v46  ;;  %v3204_v63 = vld [vmem:[%s4369_s15 + $0x20] sm:$0xff] }
 0x638   : > { %v1546_v7 = vsel %vm909_vm9, %v1545_v4, %v1527_v58  ;;  %v3201_v4 = vld [vmem:[%s4369_s15 + $0x8] sm:$0xff] }
 0x639   : > { %v1574_v8 = vsel %vm909_vm9, %v1573_v5, %v1556_v20  ;;  %v1575_v9 = vrot.slane %v1556_v20, 4  ;;  %v1552_v10 = vperm.slane %v1546_v7, %v3697_v46  ;;  %v1569_v11 = vrot.slane %v1564_v6, 4  ;;  %1789 = vmatpush.bf16.msra.mxu0 %v3206_v61  ;;  %v3200_v5 = vld [vmem:[%s4369_s15] sm:$0xff] }
 0x63a   : > { %1582 = vrot.lane.b32.xlu2 %v1574_v8, %s4389_s23  ;;  %s4428_s23 = smov 24  }
 0x63b   : > { %v1576_v12 = vsel %vm909_vm9, %v1568_v2, %v1575_v9  ;;  %v1571_v26 = vrot.slane %v1552_v10, 4  ;;  %v1570_v13 = vsel %vm909_vm9, %v1569_v11, %v1552_v10  ;;  %v3288_v2 = vld [vmem:[%s4368_s14] ss:$0 sm:$0xff] }
 0x63c   : > { %1586 = vrot.lane.b32.xlu0 %v1576_v12, %s4391_s20  ;;  %s4421_s20 = smov 96  }
 0x63d   : > { %v1572_v15 = vsel %vm909_vm9, %v1564_v6, %v1571_v26  ;;  %1790 = vmatpush.bf16.msra.mxu0 %v3205_v62 }
 0x63e   : > { %1578 = vrot.lane.b32.xlu1 %v1572_v15, %s4390_s27  ;;  %s4420_s27 = smov 80  }
 0x641   : > { %1791 = vmatpush.bf16.msra.mxu0 %v3204_v63 }
 0x645   : > { %1792 = vmatpush.bf16.msra.mxu0 %v3203_v0 }
 0x649   : > { %1793 = vmatpush.bf16.msra.mxu0 %v3202_v1 }
 0x64d   : > { %1794 = vmatpush.bf16.msra.mxu0 %v3201_v4 }
 0x651   : > { %1795 = vmatpush.bf16.msra.mxu0 %v3200_v5 }
 0x694   : > { %v1583_v18 = vpop.permute.xlu2 %1582 }
 0x6ae   : > { %v1587_v22 = vpop.permute.xlu0 %1586 }
 0x6b0   : > { %v1579_v17 = vpop.permute.xlu1 %1578 }
 0x6b1   : > { %v1589_v21 = vsel %vm1255_vm10, %v1570_v13, %v1579_v17 }
 0x6b2   : > { %v1591_v14 = vsel %vm1590_vm13, %v1589_v21, %v1583_v18 }
 0x6b3   : > { %v1593_v24 = vsel %vm1592_vm14, %v1591_v14, %v1587_v22  ;;  %v3289_v14 = vld [vmem:[%s4370_s16] ss:$0 sm:$0xff] }
 0x6b4   : > { %v1594_v25 = vpack.c.bf16 %v1593_v24, %v1593_v24 }
 0x6b6   : > { %3023 = vmatmul.msk.bf16.vlgmr.msrb.gmra.mxu2 %vm764_vm1, %v1594_v25 }
 0x739   : > { %v1623_v28 = vpop.f32.mrf.mxu2 }
 0x73a   : > { %v1627_v29 = vadd.f32 %v1623_v28, %v3642_v51  ;;  %v3199_v51 = vld [vmem:[%s4367_s13 + $0x8] sm:$0xff] }
 0x73b   : > { %1695 = vmatpush.bf16.msra.mxu3 %v3199_v51 }
 0x73c   : > { %v3928_v30 = vadd.f32 %v3285_v27, %v1627_v29 }
 0x73e   : > { %v1635_v32 = vsel %vm764_vm1, %v3928_v30, 0.0 }
 0x73f   : > { %1636 = vadd.xlane.f32.xlu1 %v1635_v32  ;;  %1696 = vmatpush.bf16.msra.mxu3 %v3198_v40 }
 0x741   : > { %v1625_v33 = vpop.f32.mrf.mxu2 }
 0x7b2   : > { %v1637_v35 = vpop.xlane.xlu1 %1636 }
 0x7b3   : > { %v1638_v36 = vmul.f32 %v1637_v35, %v3631_v31 }
 0x7b5   : > { %v1639_v37 = vsub.f32 %v3928_v30, %v1638_v36 }
 0x7b7   : > { %v1640_v38 = vmul.f32 %v1639_v37, %v1639_v37 }
 0x7b9   : > { %v1641_v39 = vsel %vm764_vm1, %v1640_v38, 0.0  ;;  %v3208_v38 = vld [vmem:[%s4361_s7 + $0x10] sm:$0xff] }
 0x7ba   : > { %1642 = vadd.xlane.f32.xlu0 %v1641_v39 }
 0x82d   : > { %v1643_v41 = vpop.xlane.xlu0 %1642 }
 0x82e   : > { %v1644_v42 = vmul.f32 %v1643_v41, %v3631_v31 }
 0x830   : > { %v1645_v44 = vadd.f32 1e-05, %v1644_v42 }
 0x832   : > { %3320 = vrsqrt.f32 %v1645_v44  ;;  %vm1652_vm0 = vweird.f32 %v1645_v44 }
 0x838   : > { %v3321_v45 = vpop.eup %3320 }
 0x839   : > { %v1647_v47 = vmul.f32 %v3321_v45, %v1645_v44  ;;  %vm1653_vm15 = vweird.f32 %v3321_v45 }
 0x83a   : > { %vm1654_vm2 = vmor %vm1652_vm0, %vm1653_vm15 }
 0x83b   : > { %v1648_v48 = vmul.f32 %v3321_v45, %v1647_v47 }
 0x83d   : > { %v1649_v49 = vmul.f32 0.5, %v1648_v48 }
 0x83f   : > { %v1650_v50 = vsub.f32 1.5, %v1649_v49  ;;  %v3290_v49 = vld [vmem:[%s4418_s5 + $0x1] ss:$0 sm:$0xff] }
 0x841   : > { %v1651_v52 = vmul.f32 %v3321_v45, %v1650_v50 }
 0x843   : > { %v1655_v43 = vsel %vm1654_vm2, %v3321_v45, %v1651_v52  ;;  %vm2816_vm2 = vcmask 253952  }
 0x844   : > { %v1656_v55 = vmul.f32 %v1655_v43, %v1639_v37 }
 0x846   : > { %v1660_v57 = vmul.f32 %v3286_v53, %v1656_v55  ;;  %v3291_v53 = vld [vmem:[%s4419_s6 + $0x1] ss:$0 sm:$0xff] }
 0x848   : > { %v1664_v58 = vadd.f32 %v3287_v56, %v1660_v57  ;;  %v3292_v57 = vld [vmem:[%s4362_s8 + $0x1] ss:$0 sm:$0xff] }
 0x84a   : > { %v1665_v59 = vpack.c.bf16 %v1664_v58, %v1664_v58 }
 0x84c   : > { %3032 = vmatmul.msk.bf16.vlgmr.msra.gmra.mxu3 %vm764_vm1, %v1665_v59 }
 0x8cf   : > { %v1698_v3 = vpop.f32.mrf.mxu3 }
 0x8d0   : > { %v1699_v19 = vadd.f32 %v3288_v2, %v1698_v3 }
 0x8d2   : > { %v3033_v20 = vmul.f32 -1.702, %v1699_v19 }
 0x8d4   : > { %v1704_v6 = vmul.f32 1.442695, %v3033_v20 }
 0x8d6   : > { %3322 = vpow2.f32 %v1704_v6 }
 0x8d7   : > { %v1700_v7 = vpop.f32.mrf.mxu3 }
 0x8dc   : > { %v3323_v8 = vpop.eup %3322 }
 0x8dd   : > { %v1706_v9 = vadd.f32 1.0, %v3323_v8 }
 0x8df   : > { %3324 = vrcp.f32 %v1706_v9  ;;  %v1718_v26 = vand.u32 2147483648, %v1706_v9  ;;  %v1716_v15 = vand.u32 2147483647, %v1706_v9  ;;  %vm1712_vm4 = vweird.f32 %v1706_v9 }
 0x8e1   : > { %v1719_v34 = vor.u32 1.1754944e-38, %v1718_v26  ;;  %vm1717_vm6 = vcmp.eq.f32.partialorder %v1716_v15, 8.507059e+37 }
 0x8e5   : > { %v3325_v10 = vpop.eup %3324 }
 0x8e6   : > { %v1708_v11 = vmul.f32 %v3325_v10, %v1706_v9  ;;  %vm1713_vm3 = vweird.f32 %v3325_v10 }
 0x8e7   : > { %vm1714_vm5 = vmor %vm1712_vm4, %vm1713_vm3 }
 0x8e8   : > { %v1709_v12 = vsub.f32 1.0, %v1708_v11 }
 0x8ea   : > { %v1710_v13 = vmul.f32 %v3325_v10, %v1709_v12 }
 0x8ec   : > { %v1711_v16 = vadd.f32 %v3325_v10, %v1710_v13 }
 0x8ee   : > { %v1715_v17 = vsel %vm1714_vm5, %v3325_v10, %v1711_v16 }
 0x8ef   : > { %v1720_v18 = vsel %vm1717_vm6, %v1719_v34, %v1715_v17 }
 0x8f0   : > { %v1722_v21 = vmul.f32 %v1720_v18, %v1699_v19 }
 0x8f2   : > { %v1723_v22 = vpack.c.bf16 %v1722_v21, %v1722_v21 }
 0x8f4   : > { %1796 = vmatmul.bf16.vlgmr.msra.gmra.mxu0 %v1723_v22 }
 0x971   : > { %v1797_v24 = vpop.f32.mrf.mxu0 }
 0x972   : > { %v1801_v25 = vadd.f32 %v1797_v24, %v3928_v30  ;;  %v3209_v30 = vld [vmem:[%s4361_s7 + $0x18] sm:$0xff] }
 0x973   : > { %1873 = vmatpush.bf16.msra.mxu1 %v3209_v30 }
 0x974   : > { %v3980_v27 = vadd.f32 %v3289_v14, %v1801_v25 }
 0x976   : > { %v1811_v28 = vsel %vm764_vm1, %v3980_v27, 0.0 }
 0x977   : > { %1812 = vadd.xlane.f32.xlu2 %v1811_v28  ;;  %1874 = vmatpush.bf16.msra.mxu1 %v3208_v38 }
 0x979   : > { %v1799_v29 = vpop.f32.mrf.mxu0 }
 0x9ea   : > { %v1813_v32 = vpop.xlane.xlu2 %1812 }
 0x9eb   : > { %v1814_v33 = vmul.f32 %v1813_v32, %v3631_v31 }
 0x9ed   : > { %v1815_v35 = vsub.f32 %v3980_v27, %v1814_v33 }
 0x9ef   : > { %v1816_v36 = vmul.f32 %v1815_v35, %v1815_v35 }
 0x9f1   : > { %v1817_v37 = vsel %vm764_vm1, %v1816_v36, 0.0 }
 0x9f2   : > { %1818 = vadd.xlane.f32.xlu1 %v1817_v37 }
 0xa65   : > { %v1819_v39 = vpop.xlane.xlu1 %1818 }
 0xa66   : > { %v1820_v51 = vmul.f32 %v1819_v39, %v3631_v31 }
 0xa68   : > { %v1821_v40 = vadd.f32 1e-05, %v1820_v51 }
 0xa6a   : > { %3326 = vrsqrt.f32 %v1821_v40  ;;  %vm1828_vm8 = vweird.f32 %v1821_v40 }
 0xa70   : > { %v3327_v41 = vpop.eup %3326 }
 0xa71   : > { %v1823_v42 = vmul.f32 %v3327_v41, %v1821_v40  ;;  %vm1829_vm7 = vweird.f32 %v3327_v41 }
 0xa72   : > { %vm1830_vm15 = vmor %vm1828_vm8, %vm1829_vm7 }
 0xa73   : > { %v1824_v44 = vmul.f32 %v3327_v41, %v1823_v42 }
 0xa75   : > { %v1825_v45 = vmul.f32 0.5, %v1824_v44 }
 0xa77   : > { %v1826_v47 = vsub.f32 1.5, %v1825_v45 }
 0xa79   : > { %v1827_v48 = vmul.f32 %v3327_v41, %v1826_v47 }
 0xa7b   : > { %v1831_v50 = vsel %vm1830_vm15, %v3327_v41, %v1827_v48 }
 0xa7c   : > { %v1832_v52 = vmul.f32 %v1831_v50, %v1815_v35 }
 0xa7e   : > { %v1836_v43 = vmul.f32 %v3290_v49, %v1832_v52 }
 0xa80   : > { %v1840_v55 = vadd.f32 %v3291_v53, %v1836_v43 }
 0xa82   : > { %v1841_v56 = vpack.c.bf16 %v1840_v55, %v1840_v55 }
 0xa84   : > { %3081 = vmatmul.msk.bf16.vlgmr.msra.gmra.mxu1 %vm764_vm1, %v1841_v56 }
 0xb01   : > { %v1876_v58 = vpop.f32.mrf.mxu1 }
 0xb02   : > { %v4004_v59 = vadd.f32 %v3292_v57, %v1876_v58 }
 0xb04   : > { %1893 = vrot.lane.b32.xlu1 %v4004_v59, %s3418_s1  ;;  %1887 = vrot.lane.b32.xlu2 %v4004_v59, %s3420_s30  ;;  %s4424_s1 = smov 64   ;;  %v1916_v20 = vrot.slane %v4004_v59, 4  ;;  %s4426_s30 = smov 48  }
 0xb05   : > { %1881 = vrot.lane.b32.xlu0 %v4004_v59, %s3419_s4  ;;  %s4425_s4 = smov 56  }
 0xb09   : > { %v1878_v60 = vpop.f32.mrf.mxu1 }
 0xb0c   : > { %1896 = vrot.lane.b32.xlu1 %v4004_v59, %s4420_s27  ;;  %1890 = vrot.lane.b32.xlu2 %v4004_v59, %s4421_s20 }
 0xb0d   : > { %1884 = vrot.lane.b32.xlu0 %v4004_v59, %s4422_s25  ;;  %s620_s25 = sand.u32 1, %s3406_s22  }
 0xb15   : > { %1899 = vrot.lane.b32.xlu0 %v4004_v59, %s4423_s28 }
 0xb1d   : > { %1902 = vrot.lane.b32.xlu0 %v4004_v59, %s4424_s1 }
 0xb5e   : > { %v1888_v61 = vpop.permute.xlu2 %1887 }
 0xb5f   : > { %v1926_v1 = vrot.slane %v1888_v61, 4 }
 0xb66   : > { %v1891_v3 = vpop.permute.xlu2 %1890 }
 0xb67   : > { %v1940_v7 = vrot.slane %v1891_v3, 4 }
 0xb76   : > { %v1894_v62 = vpop.permute.xlu1 %1893 }
 0xb77   : > { %v1882_v63 = vpop.permute.xlu0 %1881  ;;  %v1952_v25 = vrot.slane %v1894_v62, 4 }
 0xb78   : > { %v1928_v0 = vrot.slane %v1882_v63, 4  ;;  %v1927_v4 = vsel %vm909_vm9, %v1926_v1, %v1882_v63 }
 0xb79   : > { %v1933_v11 = vperm.slane %v1927_v4, %v3684_v23 }
 0xb7a   : > { %v1929_v2 = vsel %vm909_vm9, %v1888_v61, %v1928_v0 }
 0xb7b   : > { %v1937_v5 = vperm.slane %v1929_v2, %v3684_v23  ;;  %v1962_v18 = vrot.slane %v1933_v11, 4 }
 0xb7d   : > { %v1974_v15 = vrot.slane %v1937_v5, 4 }
 0xb7e   : > { %v1897_v19 = vpop.permute.xlu1 %1896 }
 0xb7f   : > { %v1885_v6 = vpop.permute.xlu0 %1884  ;;  %v1938_v8 = vrot.slane %v1897_v19, 4  ;;  %v1941_v26 = vsel %vm909_vm9, %v1897_v19, %v1940_v7 }
 0xb80   : > { %v1914_v9 = vrot.slane %v1885_v6, 4  ;;  %v1917_v10 = vsel %vm909_vm9, %v1885_v6, %v1916_v20  ;;  %v1949_v21 = vperm.slane %v1941_v26, %v3684_v23 }
 0xb81   : > { %v1925_v12 = vperm.slane %v1917_v10, %v3684_v23  ;;  %v1939_v17 = vsel %vm909_vm9, %v1938_v8, %v1891_v3 }
 0xb82   : > { %v1915_v13 = vsel %vm909_vm9, %v1914_v9, %v4004_v59  ;;  %v1945_v28 = vperm.slane %v1939_v17, %v3684_v23  ;;  %v2000_v37 = vrot.slane %v1949_v21, 4 }
 0xb83   : > { %v1921_v16 = vperm.slane %v1915_v13, %v3684_v23  ;;  %v1976_v34 = vrot.slane %v1925_v12, 4  ;;  %v1975_v14 = vsel %vm909_vm9, %v1974_v15, %v1925_v12 }
 0xb84   : > { %v1981_v35 = vperm.slane %v1975_v14, %v3697_v46  ;;  %v1988_v42 = vrot.slane %v1945_v28, 4 }
 0xb85   : > { %v1964_v22 = vrot.slane %v1921_v16, 4  ;;  %v1977_v24 = vsel %vm909_vm9, %v1937_v5, %v1976_v34  ;;  %v1963_v29 = vsel %vm909_vm9, %v1962_v18, %v1921_v16 }
 0xb86   : > { %v1985_v30 = vperm.slane %v1977_v24, %v3697_v46  ;;  %v1969_v39 = vperm.slane %v1963_v29, %v3697_v46  ;;  %v2020_v45 = vrot.slane %v1981_v35, 4 }
 0xb87   : > { %v1965_v32 = vsel %vm909_vm9, %v1933_v11, %v1964_v22  ;;  %v1900_v33 = vpop.permute.xlu0 %1899 }
 0xb88   : > { %v1950_v36 = vrot.slane %v1900_v33, 4  ;;  %v1953_v38 = vsel %vm909_vm9, %v1900_v33, %v1952_v25  ;;  %v1973_v51 = vperm.slane %v1965_v32, %v3697_v46  ;;  %v2024_v49 = vrot.slane %v1985_v30, 4 }
 0xb89   : > { %v1961_v41 = vperm.slane %v1953_v38, %v3684_v23  ;;  %v2012_v43 = vrot.slane %v1969_v39, 4 }
 0xb8a   : > { %v1951_v40 = vsel %vm909_vm9, %v1950_v36, %v1894_v62  ;;  %v2016_v55 = vrot.slane %v1973_v51, 4 }
 0xb8b   : > { %v1957_v44 = vperm.slane %v1951_v40, %v3684_v23  ;;  %v1998_v47 = vrot.slane %v1961_v41, 4  ;;  %v2001_v48 = vsel %vm909_vm9, %v1961_v41, %v2000_v37 }
 0xb8c   : > { %v2009_v53 = vperm.slane %v2001_v48, %v3697_v46 }
 0xb8d   : > { %v1986_v50 = vrot.slane %v1957_v44, 4  ;;  %v1989_v52 = vsel %vm909_vm9, %v1957_v44, %v1988_v42  ;;  %v1999_v57 = vsel %vm909_vm9, %v1998_v47, %v1949_v21 }
 0xb8e   : > { %v1997_v56 = vperm.slane %v1989_v52, %v3697_v46  ;;  %v2005_v60 = vperm.slane %v1999_v57, %v3697_v46  ;;  %v2022_v61 = vrot.slane %v2009_v53, 4  ;;  %v2025_v62 = vsel %vm909_vm9, %v2009_v53, %v2024_v49 }
 0xb8f   : > { %v1987_v58 = vsel %vm909_vm9, %v1986_v50, %v1945_v28  ;;  %v2118_v2 = vrot.slane %v2025_v62, 4 }
 0xb90   : > { %v1993_v63 = vperm.slane %v1987_v58, %v3697_v46  ;;  %v2014_v0 = vrot.slane %v1997_v56, 4  ;;  %v2017_v1 = vsel %vm909_vm9, %v1997_v56, %v2016_v55  ;;  %v2018_v3 = vrot.slane %v2005_v60, 4 }
 0xb91   : > { %v2021_v4 = vsel %vm909_vm9, %v2005_v60, %v2020_v45  ;;  %v2023_v19 = vsel %vm909_vm9, %v2022_v61, %v1985_v30  ;;  %v2094_v20 = vrot.slane %v2017_v1, 4 }
 0xb92   : > { %v2010_v5 = vrot.slane %v1993_v63, 4  ;;  %v2013_v6 = vsel %vm909_vm9, %v1993_v63, %v2012_v43  ;;  %v2106_v7 = vrot.slane %v2023_v19, 4  ;;  %v2119_v8 = vsel %vm909_vm9, %v2118_v2, %v2021_v4 }
 0xb93   : > { %v2019_v9 = vsel %vm909_vm9, %v2018_v3, %v1981_v35  ;;  %v2095_v10 = vsel %vm909_vm9, %v2094_v20, %v2013_v6  ;;  %v2096_v11 = vrot.slane %v2013_v6, 4  ;;  %v2120_v12 = vrot.slane %v2021_v4, 4 }
 0xb94   : > { %v2011_v26 = vsel %vm909_vm9, %v2010_v5, %v1969_v39  ;;  %v2107_v13 = vsel %vm909_vm9, %v2106_v7, %v2019_v9  ;;  %v2108_v15 = vrot.slane %v2019_v9, 4  ;;  %v2101_v16 = vperm.slane %v2095_v10, %v3684_v23 }
 0xb95   : > { %v2113_v34 = vperm.slane %v2107_v13, %v3684_v23  ;;  %v2121_v17 = vsel %vm909_vm9, %v2025_v62, %v2120_v12  ;;  %v2125_v18 = vperm.slane %v2119_v8, %v3684_v23  ;;  %v2015_v14 = vsel %vm909_vm9, %v2014_v0, %v1973_v51 }
 0xb96   : > { %v2109_v21 = vsel %vm909_vm9, %v2023_v19, %v2108_v15  ;;  %v2129_v22 = vperm.slane %v2121_v17, %v3684_v23  ;;  %v2084_v24 = vrot.slane %v2011_v26, 4  ;;  %v2082_v29 = vrot.slane %v2015_v14, 4 }
 0xb97   : > { %v2154_v25 = vrot.slane %v2125_v18, 4  ;;  %v2156_v28 = vrot.slane %v2113_v34, 4  ;;  %v2097_v32 = vsel %vm909_vm9, %v2017_v1, %v2096_v11  ;;  %v2117_v36 = vperm.slane %v2109_v21, %v3684_v23 }
 0xb98   : > { %v2085_v33 = vsel %vm909_vm9, %v2015_v14, %v2084_v24  ;;  %v2105_v35 = vperm.slane %v2097_v32, %v3684_v23  ;;  %v2166_v37 = vrot.slane %v2129_v22, 4  ;;  %v2083_v38 = vsel %vm909_vm9, %v2082_v29, %v2011_v26 }
 0xb99   : > { %v2093_v30 = vperm.slane %v2085_v33, %v3684_v23  ;;  %v2130_v39 = vrot.slane %v2101_v16, 4  ;;  %v2155_v51 = vsel %vm909_vm9, %v2154_v25, %v2113_v34  ;;  %v2168_v42 = vrot.slane %v2117_v36, 4 }
 0xb9a   : > { %v2142_v40 = vrot.slane %v2105_v35, 4  ;;  %v2167_v41 = vsel %vm909_vm9, %v2166_v37, %v2117_v36  ;;  %v2089_v44 = vperm.slane %v2083_v38, %v3684_v23  ;;  %v2161_v48 = vperm.slane %v2155_v51, %v3697_v46 }
 0xb9b   : > { %v2173_v45 = vperm.slane %v2167_v41, %v3697_v46  ;;  %v2144_v47 = vrot.slane %v2093_v30, 4  ;;  %v2169_v50 = vsel %vm909_vm9, %v2129_v22, %v2168_v42  ;;  %v2157_v60 = vsel %vm909_vm9, %v2125_v18, %v2156_v28 }
 0xb9c   : > { %v2143_v49 = vsel %vm909_vm9, %v2142_v40, %v2093_v30  ;;  %v2131_v52 = vsel %vm909_vm9, %v2130_v39, %v2089_v44  ;;  %v2132_v53 = vrot.slane %v2089_v44, 4  ;;  %v2177_v57 = vperm.slane %v2169_v50, %v3697_v46 }
 0xb9d   : > { %v2149_v43 = vperm.slane %v2143_v49, %v3697_v46  ;;  %v2186_v55 = vrot.slane %v2173_v45, 4  ;;  %v2145_v56 = vsel %vm909_vm9, %v2105_v35, %v2144_v47  ;;  %v2137_v0 = vperm.slane %v2131_v52, %v3697_v46 }
 0xb9e   : > { %v2153_v58 = vperm.slane %v2145_v56, %v3697_v46  ;;  %v2190_v63 = vrot.slane %v2177_v57, 4  ;;  %v2133_v3 = vsel %vm909_vm9, %v2101_v16, %v2132_v53  ;;  %v2178_v20 = vrot.slane %v2161_v48, 4 }
 0xb9f   : > { %v2187_v61 = vsel %vm909_vm9, %v2186_v55, %v2149_v43  ;;  %v2188_v62 = vrot.slane %v2149_v43, 4  ;;  %v2165_v5 = vperm.slane %v2157_v60, %v3697_v46  ;;  %v2180_v11 = vrot.slane %v2137_v0, 4  ;;  %v1903_v60 = vpop.permute.xlu0 %1902 }
 0xba0   : > { %v2252_v1 = vpack.c.bf16 %v2187_v61, %v2187_v61  ;;  %v2192_v2 = vrot.slane %v2153_v58, 4  ;;  %v2191_v19 = vsel %vm909_vm9, %v2190_v63, %v2153_v58  ;;  %v2141_v12 = vperm.slane %v2133_v3, %v3697_v46 }
 0xba1   : > { %v2189_v4 = vsel %vm909_vm9, %v2173_v45, %v2188_v62  ;;  %v2254_v8 = vpack.c.bf16 %v2191_v19, %v2191_v19  ;;  %v2182_v26 = vrot.slane %v2165_v5, 4  ;;  %v2179_v34 = vsel %vm909_vm9, %v2178_v20, %v2137_v0 }
 0xba2   : > { %v2264_v6 = vsel %vm1255_vm10, %v2252_v1, 0  ;;  %v2253_v7 = vpack.c.bf16 %v2189_v4, %v2189_v4  ;;  %v2193_v9 = vsel %vm909_vm9, %v2177_v57, %v2192_v2  ;;  %v2181_v17 = vsel %vm909_vm9, %v2161_v48, %v2180_v11 }
 0xba3   : > { %2273 = vmatpush.bf16.xpose.msra.mxu2 %v2264_v6  ;;  %v2255_v10 = vpack.c.bf16 %v2193_v9, %v2193_v9  ;;  %v2302_v15 = vsel %vm1255_vm10, %v2254_v8, 0  ;;  %v2183_v18 = vsel %vm909_vm9, %v2182_v26, %v2141_v12  ;;  %v2248_v21 = vpack.c.bf16 %v2179_v34, %v2179_v34 }
 0xba4   : > { %v2283_v13 = vsel %vm1255_vm10, %v2253_v7, 0  ;;  %2311 = vmatpush.bf16.xpose.msrb.mxu1 %v2302_v15  ;;  %v2249_v22 = vpack.c.bf16 %v2181_v17, %v2181_v17  ;;  %v2250_v14 = vpack.c.bf16 %v2183_v18, %v2183_v18  ;;  %v2184_v24 = vrot.slane %v2141_v12, 4 }
 0xba5   : > { %2292 = vmatpush.bf16.xpose.msrb.mxu3 %v2283_v13  ;;  %v2321_v16 = vsel %vm1255_vm10, %v2255_v10, 0 }
 0xba6   : > { %v2185_v25 = vsel %vm909_vm9, %v2165_v5, %v2184_v24  ;;  %v2028_v5 = vrot.slane %v1903_v60, 4 }
 0xba7   : > { %v2251_v28 = vpack.c.bf16 %v2185_v25, %v2185_v25 }
 0xbaa   : > { %3082 = vmatmul.msk.bf16.vlgmr.msra.gmra.mxu2 %vm1255_vm10, %v2248_v21 }
 0xbab   : > { %2330 = vmatpush.bf16.xpose.msrb.mxu2 %v2321_v16  ;;  %3084 = vmatmul.msk.bf16.vlgmr.msrb.gmra.mxu1 %vm1255_vm10, %v2250_v14 }
 0xbac   : > { %3083 = vmatmul.msk.bf16.vlgmr.msrb.gmra.mxu3 %vm1255_vm10, %v2249_v22 }
 0xbba   : > { %3085 = vmatmul.msk.bf16.vlgmr.msrb.gmra.mxu2 %vm1255_vm10, %v2251_v28 }
 0xc28   : > { %v2313_v29 = vpop.f32.mrf.mxu1 }
 0xc29   : > { %v2338_v32 = vmul.f32 0.35355338, %v2313_v29 }
 0xc2b   : > { %v2342_v33 = vsel %vm804_vm11, %v2338_v32, -1e+09 }
 0xc2c   : > { %v2350_v36 = vsel %vm1255_vm10, %v2342_v33, -inf }
 0xc2d   : > { %v2275_v35 = vpop.f32.mrf.mxu2  ;;  %2351 = vmax.xlane.f32.xlu1 %v2350_v36 }
 0xc2e   : > { %v2336_v37 = vmul.f32 0.35355338, %v2275_v35 }
 0xc2f   : > { %v2294_v30 = vpop.f32.mrf.mxu3 }
 0xc30   : > { %v2340_v38 = vsel %vm804_vm11, %v2336_v37, -1e+09  ;;  %v2315_v39 = vpop.f32.mrf.mxu1  ;;  %v2337_v40 = vmul.f32 0.35355338, %v2294_v30 }
 0xc31   : > { %v2344_v51 = vsel %vm1255_vm10, %v2340_v38, -inf }
 0xc32   : > { %2345 = vmax.xlane.f32.xlu2 %v2344_v51  ;;  %v2341_v42 = vsel %vm804_vm11, %v2337_v40, -1e+09 }
 0xc33   : > { %v2347_v45 = vsel %vm1255_vm10, %v2341_v42, -inf }
 0xc35   : > { %v2277_v41 = vpop.f32.mrf.mxu2 }
 0xc37   : > { %v2296_v44 = vpop.f32.mrf.mxu3 }
 0xc3a   : > { %2348 = vmax.xlane.f32.xlu2 %v2347_v45 }
 0xc3d   : > { %v2332_v47 = vpop.f32.mrf.mxu2 }
 0xc3e   : > { %v2339_v48 = vmul.f32 0.35355338, %v2332_v47 }
 0xc40   : > { %v2343_v49 = vsel %vm804_vm11, %v2339_v48, -1e+09 }
 0xc41   : > { %v2353_v50 = vsel %vm1255_vm10, %v2343_v49, -inf }
 0xc42   : > { %2354 = vmax.xlane.f32.xlu0 %v2353_v50 }
 0xc45   : > { %v2334_v52 = vpop.f32.mrf.mxu2 }
 0xc46   : > { %1905 = vrot.lane.b32.xlu1 %v4004_v59, %s4425_s4  ;;  %s4432_s4 = sld [smem:[#allocation19_spill]] }
 0xc4c   : > { %s3372_s28 = scalar_lea.hbm %s4432_s4, 2 }
 0xc52   : > { %1908 = vrot.lane.b32.xlu2 %v4004_v59, %s4426_s30  ;;  %s2884_s30 = scalar_lea.hbm %s4432_s4, %s3559_s2 }
 0xc56   : > { %1911 = vrot.lane.b32.xlu0 %v4004_v59, %s4427_s24  ;;  %s621_s24 = scalar_lea.vmem [#allocation2], %s620_s25 }
 0xca0   : > { %v2352_v53 = vpop.xlane.xlu1 %2351 }
 0xca1   : > { %v2358_v43 = vsub.f32 %v2342_v33, %v2352_v53 }
 0xca3   : > { %v2364_v55 = vmul.f32 1.442695, %v2358_v43 }
 0xca5   : > { %v2346_v56 = vpop.xlane.xlu2 %2345  ;;  %3328 = vpow2.f32 %v2364_v55 }
 0xca6   : > { %v2356_v54 = vsub.f32 %v2340_v38, %v2346_v56 }
 0xca8   : > { %v2360_v57 = vmul.f32 1.442695, %v2356_v54 }
 0xcaa   : > { %3330 = vpow2.f32 %v2360_v57 }
 0xcab   : > { %v4130_v58 = vpop.eup %3328 }
 0xcac   : > { %v2374_v61 = vsel %vm1255_vm10, %v4130_v58, 0.0 }
 0xcad   : > { %2375 = vadd.xlane.f32.xlu1 %v2374_v61  ;;  %v2349_v63 = vpop.xlane.xlu2 %2348 }
 0xcae   : > { %v2357_v2 = vsub.f32 %v2341_v42, %v2349_v63 }
 0xcb0   : > { %v4134_v62 = vpop.eup %3330  ;;  %v2362_v4 = vmul.f32 1.442695, %v2357_v2 }
 0xcb1   : > { %v2368_v59 = vsel %vm1255_vm10, %v4134_v62, 0.0 }
 0xcb2   : > { %2369 = vadd.xlane.f32.xlu0 %v2368_v59 }
 0xcb5   : > { %v2355_v0 = vpop.xlane.xlu0 %2354  ;;  %v1909_v19 = vpop.permute.xlu2 %1908 }
 0xcb6   : > { %v2359_v1 = vsub.f32 %v2343_v49, %v2355_v0  ;;  %v2026_v6 = vrot.slane %v1909_v19, 4  ;;  %v2029_v8 = vsel %vm909_vm9, %v1909_v19, %v2028_v5 }
 0xcb7   : > { %v2037_v12 = vperm.slane %v2029_v8, %v3684_v23 }
 0xcb8   : > { %v2366_v3 = vmul.f32 1.442695, %v2359_v1  ;;  %v1906_v9 = vpop.permute.xlu1 %1905  ;;  %v2027_v10 = vsel %vm909_vm9, %v2026_v6, %v1903_v60 }
 0xcb9   : > { %v2040_v26 = vrot.slane %v1906_v9, 4  ;;  %v2033_v13 = vperm.slane %v2027_v10, %v3684_v23  ;;  %v2064_v18 = vrot.slane %v2037_v12, 4 }
 0xcba   : > { %3332 = vpow2.f32 %v2366_v3 }
 0xcbb   : > { %3334 = vpow2.f32 %v2362_v4  ;;  %v2052_v14 = vrot.slane %v2033_v13, 4 }
 0xcc0   : > { %v4138_v20 = vpop.eup %3332 }
 0xcc1   : > { %v2377_v7 = vsel %vm1255_vm10, %v4138_v20, 0.0  ;;  %v4144_v11 = vpop.eup %3334 }
 0xcc2   : > { %2378 = vadd.xlane.f32.xlu2 %v2377_v7  ;;  %v2371_v17 = vsel %vm1255_vm10, %v4144_v11, 0.0 }
 0xcc8   : > { %v1912_v15 = vpop.permute.xlu0 %1911 }
 0xcc9   : > { %v2038_v16 = vrot.slane %v1912_v15, 4  ;;  %v2041_v34 = vsel %vm909_vm9, %v1912_v15, %v2040_v26 }
 0xcca   : > { %v2049_v21 = vperm.slane %v2041_v34, %v3684_v23  ;;  %2372 = vadd.xlane.f32.xlu2 %v2371_v17 }
 0xccb   : > { %v2039_v22 = vsel %vm909_vm9, %v2038_v16, %v1906_v9 }
 0xccc   : > { %v2045_v24 = vperm.slane %v2039_v22, %v3684_v23  ;;  %v2062_v25 = vrot.slane %v2049_v21, 4  ;;  %v2065_v28 = vsel %vm909_vm9, %v2049_v21, %v2064_v18 }
 0xccd   : > { %v2073_v29 = vperm.slane %v2065_v28, %v3697_v46 }
 0xcce   : > { %v2050_v32 = vrot.slane %v2045_v24, 4  ;;  %v2053_v33 = vsel %vm909_vm9, %v2045_v24, %v2052_v14  ;;  %v2063_v35 = vsel %vm909_vm9, %v2062_v25, %v2037_v12 }
 0xccf   : > { %v2061_v36 = vperm.slane %v2053_v33, %v3697_v46  ;;  %v2069_v37 = vperm.slane %v2063_v35, %v3697_v46  ;;  %v2080_v30 = vrot.slane %v2073_v29, 4 }
 0xcd0   : > { %v2051_v38 = vsel %vm909_vm9, %v2050_v32, %v2033_v13 }
 0xcd1   : > { %v2057_v39 = vperm.slane %v2051_v38, %v3697_v46  ;;  %v2076_v51 = vrot.slane %v2061_v36, 4  ;;  %v2078_v40 = vrot.slane %v2069_v37, 4  ;;  %v2081_v41 = vsel %vm909_vm9, 0.0, %v2080_v30 }
 0xcd2   : > { %v2205_v42 = vsel %vm909_vm9, %v2080_v30, %v2069_v37  ;;  %v2210_v44 = vrot.slane %v2081_v41, 4 }
 0xcd3   : > { %v2074_v45 = vrot.slane %v2057_v39, 4  ;;  %v2077_v47 = vsel %vm909_vm9, 0.0, %v2076_v51  ;;  %v2079_v48 = vsel %vm909_vm9, 0.0, %v2078_v40  ;;  %v2194_v49 = vsel %vm909_vm9, %v2076_v51, %v2057_v39 }
 0xcd4   : > { %v2199_v50 = vrot.slane %v2077_v47, 4  ;;  %v2209_v52 = vperm.slane %v2205_v42, %v3684_v23  ;;  %v2211_v53 = vsel %vm909_vm9, %v2210_v44, %v2079_v48  ;;  %v2198_v43 = vperm.slane %v2194_v49, %v3684_v23 }
 0xcd5   : > { %v2075_v55 = vsel %vm909_vm9, 0.0, %v2074_v45  ;;  %v2215_v56 = vperm.slane %v2211_v53, %v3684_v23 }
 0xcd6   : > { %v2230_v54 = vrot.slane %v2209_v52, 4  ;;  %v2200_v57 = vsel %vm909_vm9, %v2199_v50, %v2075_v55  ;;  %v2218_v60 = vrot.slane %v2198_v43, 4 }
 0xcd7   : > { %v2204_v61 = vperm.slane %v2200_v57, %v3684_v23  ;;  %v2228_v59 = vrot.slane %v2215_v56, 4 }
 0xcd8   : > { %v2231_v63 = vsel %vm909_vm9, %v2215_v56, %v2230_v54 }
 0xcd9   : > { %v2219_v0 = vsel %vm909_vm9, %v2204_v61, %v2218_v60  ;;  %v2239_v1 = vperm.slane %v2231_v63, %v3697_v46  ;;  %v2216_v2 = vrot.slane %v2204_v61, 4  ;;  %v2229_v3 = vsel %vm909_vm9, %v2228_v59, %v2209_v52 }
 0xcda   : > { %v2227_v4 = vperm.slane %v2219_v0, %v3697_v46  ;;  %v2235_v19 = vperm.slane %v2229_v3, %v3697_v46 }
 0xcdb   : > { %v2244_v5 = vrot.slane %v2239_v1, 4  ;;  %v2217_v6 = vsel %vm909_vm9, %v2216_v2, %v2198_v43 }
 0xcdc   : > { %v2223_v7 = vperm.slane %v2217_v6, %v3697_v46  ;;  %v2240_v8 = vrot.slane %v2235_v19, 4  ;;  %v2246_v9 = vrot.slane %v2227_v4, 4 }
 0xcdd   : > { %v2245_v10 = vsel %vm909_vm9, %v2244_v5, %v2227_v4 }
 0xcde   : > { %v2258_v12 = vpack.c.bf16 %v2245_v10, %v2245_v10  ;;  %v2241_v26 = vsel %vm909_vm9, %v2240_v8, %v2223_v7  ;;  %v2247_v13 = vsel %vm909_vm9, %v2239_v1, %v2246_v9  ;;  %v2242_v15 = vrot.slane %v2223_v7, 4 }
 0xcdf   : > { %v2256_v16 = vpack.c.bf16 %v2241_v26, %v2241_v26  ;;  %v2259_v34 = vpack.c.bf16 %v2247_v13, %v2247_v13 }
 0xce0   : > { %v2434_v17 = vsel %vm1393_vm12, %v2258_v12, 0  ;;  %v2243_v18 = vsel %vm909_vm9, %v2235_v19, %v2242_v15 }
 0xce1   : > { %2443 = vmatpush.bf16.msra.mxu1 %v2434_v17  ;;  %v2396_v21 = vsel %vm1393_vm12, %v2256_v16, 0  ;;  %v2453_v22 = vsel %vm1393_vm12, %v2259_v34, 0  ;;  %v2257_v14 = vpack.c.bf16 %v2243_v18, %v2243_v18 }
 0xce2   : > { %2405 = vmatpush.bf16.msra.mxu3 %v2396_v21  ;;  %2462 = vmatpush.bf16.msra.mxu2 %v2453_v22 }
 0xce3   : > { %v2415_v24 = vsel %vm1393_vm12, %v2257_v14, 0 }
 0xce4   : > { %2424 = vmatpush.bf16.msrb.mxu0 %v2415_v24 }
 0xd20   : > { %v2376_v25 = vpop.xlane.xlu1 %2375 }
 0xd21   : > { %3336 = vrcp.f32 %v2376_v25 }
 0xd25   : > { %v2370_v28 = vpop.xlane.xlu0 %2369 }
 0xd26   : > { %3338 = vrcp.f32 %v2370_v28 }
 0xd27   : > { %v3337_v29 = vpop.eup %3336 }
 0xd28   : > { %v2386_v32 = vmul.f32 %v3337_v29, %v4130_v58 }
 0xd2a   : > { %v2390_v33 = vpack.c.bf16 %v2386_v32, %v2386_v32 }
 0xd2c   : > { %v3339_v35 = vpop.eup %3338  ;;  %3088 = vmatmul.msk.bf16.vlgmr.msra.gmra.mxu1 %vm1255_vm10, %v2390_v33 }
 0xd2d   : > { %v2384_v36 = vmul.f32 %v3339_v35, %v4134_v62 }
 0xd2f   : > { %v2388_v37 = vpack.c.bf16 %v2384_v36, %v2384_v36 }
 0xd31   : > { %3086 = vmatmul.msk.bf16.vlgmr.msra.gmra.mxu3 %vm1255_vm10, %v2388_v37 }
 0xd35   : > { %v2379_v30 = vpop.xlane.xlu2 %2378 }
 0xd36   : > { %3340 = vrcp.f32 %v2379_v30 }
 0xd3c   : > { %v3341_v38 = vpop.eup %3340 }
 0xd3d   : > { %v2387_v39 = vmul.f32 %v3341_v38, %v4138_v20  ;;  %v2373_v51 = vpop.xlane.xlu2 %2372 }
 0xd3e   : > { %3342 = vrcp.f32 %v2373_v51 }
 0xd3f   : > { %v2391_v40 = vpack.c.bf16 %v2387_v39, %v2387_v39 }
 0xd41   : > { %3089 = vmatmul.msk.bf16.vlgmr.msra.gmra.mxu2 %vm1255_vm10, %v2391_v40 }
 0xd44   : > { %v3343_v58 = vpop.eup %3342 }
 0xd45   : > { %v2385_v41 = vmul.f32 %v3343_v58, %v4144_v11 }
 0xd47   : > { %v2389_v42 = vpack.c.bf16 %v2385_v41, %v2385_v41 }
 0xd49   : > { %3087 = vmatmul.msk.bf16.vlgmr.msrb.gmra.mxu0 %vm1255_vm10, %v2389_v42 }
 0xda9   : > { %v2445_v62 = vpop.f32.mrf.mxu1 }
 0xdaa   : > { %v2468_v48 = vrot.slane %v2445_v62, 4 }
 0xdb1   : > { %v2447_v44 = vpop.f32.mrf.mxu1 }
 0xdb4   : > { %v2407_v45 = vpop.f32.mrf.mxu3 }
 0xdb5   : > { %v2470_v49 = vrot.slane %v2407_v45, 4  ;;  %v2469_v50 = vsel %vm909_vm9, %v2468_v48, %v2407_v45 }
 0xdb6   : > { %v2475_v52 = vperm.slane %v2469_v50, %v3684_v23 }
 0xdb7   : > { %v2471_v20 = vsel %vm909_vm9, %v2445_v62, %v2470_v49 }
 0xdb8   : > { %v2479_v55 = vperm.slane %v2471_v20, %v3684_v23  ;;  %v2494_v57 = vrot.slane %v2475_v52, 4 }
 0xdba   : > { %v2506_v59 = vrot.slane %v2479_v55, 4 }
 0xdbc   : > { %v2409_v47 = vpop.f32.mrf.mxu3 }
 0xdc4   : > { %v2464_v53 = vpop.f32.mrf.mxu2 }
 0xdc5   : > { %v2480_v43 = vrot.slane %v2464_v53, 4 }
 0xdc6   : > { %v2426_v11 = vpop.f32.mrf.mxu0 }
 0xdc7   : > { %v2481_v56 = vsel %vm909_vm9, %v2480_v43, %v2426_v11  ;;  %v2482_v54 = vrot.slane %v2426_v11, 4 }
 0xdc8   : > { %v2487_v60 = vperm.slane %v2481_v56, %v3684_v23 }
 0xdc9   : > { %v2483_v61 = vsel %vm909_vm9, %v2464_v53, %v2482_v54  ;;  %v3211_v53 = vld [vmem:[%s4363_s9 + $0x18] sm:$0xff] }
 0xdca   : > { %v2491_v63 = vperm.slane %v2483_v61, %v3684_v23  ;;  %v2492_v0 = vrot.slane %v2487_v60, 4  ;;  %v2495_v1 = vsel %vm909_vm9, %v2487_v60, %v2494_v57  ;;  %2620 = vmatpush.bf16.msrb.mxu3 %v3211_v53  ;;  %v3293_v61 = vld [vmem:[%s4364_s10 + $0x1] ss:$0 sm:$0xff] }
 0xdcb   : > { %v2503_v2 = vperm.slane %v2495_v1, %v3697_v46 }
 0xdcc   : > { %v2493_v3 = vsel %vm909_vm9, %v2492_v0, %v2475_v52  ;;  %v2504_v4 = vrot.slane %v2491_v63, 4  ;;  %v2507_v19 = vsel %vm909_vm9, %v2491_v63, %v2506_v59  ;;  %v2466_v5 = vpop.f32.mrf.mxu2 }
 0xdcd   : > { %v2499_v6 = vperm.slane %v2493_v3, %v3697_v46  ;;  %v2515_v7 = vperm.slane %v2507_v19, %v3697_v46  ;;  %v2518_v8 = vrot.slane %v2503_v2, 4 }
 0xdce   : > { %v2505_v9 = vsel %vm909_vm9, %v2504_v4, %v2479_v55  ;;  %v2428_v10 = vpop.f32.mrf.mxu0 }
 0xdcf   : > { %v2511_v12 = vperm.slane %v2505_v9, %v3697_v46  ;;  %v2516_v26 = vrot.slane %v2499_v6, 4  ;;  %v2519_v13 = vsel %vm909_vm9, 0.0, %v2518_v8  ;;  %v2522_v15 = vrot.slane %v2515_v7, 4  ;;  %v3212_v7 = vld [vmem:[%s4367_s13 + $0x10] sm:$0xff] }
 0xdd0   : > { %v2524_v16 = vsel %vm909_vm9, %v2518_v8, %v2499_v6  ;;  %v2529_v34 = vrot.slane %v2519_v13, 4 }
 0xdd1   : > { %v2517_v17 = vsel %vm909_vm9, 0.0, %v2516_v26  ;;  %v2520_v18 = vrot.slane %v2511_v12, 4  ;;  %v2523_v21 = vsel %vm909_vm9, 0.0, %v2522_v15  ;;  %v2528_v22 = vperm.slane %v2524_v16, %v3684_v23 }
 0xdd2   : > { %v2540_v14 = vrot.slane %v2523_v21, 4  ;;  %v2530_v24 = vsel %vm909_vm9, %v2529_v34, %v2517_v17  ;;  %v2535_v25 = vsel %vm909_vm9, %v2522_v15, %v2511_v12  ;;  %v3294_v17 = vld [vmem:[%s4365_s11 + $0x1] ss:$0 sm:$0xff] }
 0xdd3   : > { %v2521_v28 = vsel %vm909_vm9, 0.0, %v2520_v18  ;;  %v2534_v29 = vperm.slane %v2530_v24, %v3684_v23  ;;  %v2539_v32 = vperm.slane %v2535_v25, %v3684_v23  ;;  %v2548_v33 = vrot.slane %v2528_v22, 4 }
 0xdd4   : > { %v2541_v35 = vsel %vm909_vm9, %v2540_v14, %v2521_v28  ;;  %v3221_v28 = vld [vmem:[%s4369_s15 + $0x78] sm:$0xff] }
 0xdd5   : > { %v2545_v36 = vperm.slane %v2541_v35, %v3684_v23  ;;  %v2549_v37 = vsel %vm909_vm9, %v2534_v29, %v2548_v33  ;;  %v2560_v30 = vrot.slane %v2539_v32, 4  ;;  %v2546_v38 = vrot.slane %v2534_v29, 4  ;;  %2794 = vmatpush.bf16.msrb.mxu1 %v3221_v28  ;;  %v3220_v29 = vld [vmem:[%s4369_s15 + $0x70] sm:$0xff]  ;;  %v3218_v33 = vld [vmem:[%s4369_s15 + $0x60] sm:$0xff]  ;;  %v3217_v35 = vld [vmem:[%s4369_s15 + $0x58] sm:$0xff] }
 0xdd6   : > { %v2557_v39 = vperm.slane %v2549_v37, %v3697_v46  ;;  %v3216_v37 = vld [vmem:[%s4369_s15 + $0x50] sm:$0xff] }
 0xdd7   : > { %v2561_v51 = vsel %vm909_vm9, %v2545_v36, %v2560_v30  ;;  %v2547_v40 = vsel %vm909_vm9, %v2546_v38, %v2528_v22  ;;  %v2558_v58 = vrot.slane %v2545_v36, 4  ;;  %v3295_v22 = vld [vmem:[%s4366_s12 + $0x1] ss:$0 sm:$0xff] }
 0xdd8   : > { %v2569_v41 = vperm.slane %v2561_v51, %v3697_v46  ;;  %v2576_v42 = vrot.slane %v2557_v39, 4  ;;  %v2553_v62 = vperm.slane %v2547_v40, %v3697_v46  ;;  %v3296_v36 = vld [vmem:[%s4368_s14 + $0x1] ss:$0 sm:$0xff] }
 0xdd9   : > { %v2559_v44 = vsel %vm909_vm9, %v2558_v58, %v2539_v32  ;;  %2795 = vmatpush.bf16.msrb.mxu1 %v3220_v29  ;;  %v3219_v32 = vld [vmem:[%s4369_s15 + $0x68] sm:$0xff]  ;;  %v3214_v40 = vld [vmem:[%s4369_s15 + $0x40] sm:$0xff] }
 0xdda   : > { %v2577_v23 = vsel %vm909_vm9, %v2569_v41, %v2576_v42  ;;  %v2574_v45 = vrot.slane %v2569_v41, 4  ;;  %v2565_v47 = vperm.slane %v2559_v44, %v3697_v46  ;;  %v2572_v48 = vrot.slane %v2553_v62, 4  ;;  %v3210_v46 = vld [vmem:[%s4363_s9 + $0x10] sm:$0xff] }
 0xddb   : > { %2587 = vrot.lane.b32.xlu2 %v2577_v23, %s4428_s23  ;;  %2621 = vmatpush.bf16.msrb.mxu3 %v3210_v46  ;;  %s2886_s23 = sshll.u32 %s621_s24, 4  ;;  %s2887_s23 = int_to_ptr.vmem [resolvable:$true] %s2886_s23 }
 0xddc   : > { %v2575_v49 = vsel %vm909_vm9, %v2574_v45, %v2557_v39  ;;  %v2570_v50 = vrot.slane %v2565_v47, 4  ;;  %v2573_v20 = vsel %vm909_vm9, %v2565_v47, %v2572_v48  ;;  %v3215_v39 = vld [vmem:[%s4369_s15 + $0x48] sm:$0xff] }
 0xddd   : > { %2583 = vrot.lane.b32.xlu1 %v2575_v49, %s4429_s0  ;;  %2579 = vrot.lane.b32.xlu0 %v2573_v20, %s4430_s26  ;;  %s2888_s0 = sshll.u32 %s2884_s30, 4  ;;  %s2876_s26 = scalar_lea.sflag [#allocation3], %s620_s25  ;;  %s2889_s0 = int_to_ptr.hbm [resolvable:$true] %s2888_s0 }
 0xdde   : > { %v2571_v52 = vsel %vm909_vm9, %v2570_v50, %v2553_v62  ;;  %2796 = vmatpush.bf16.msrb.mxu1 %v3219_v32  ;;  %s3366_s3 = sshra.s32 %s2889_s0, 4  ;;  %s3367_s3 = int_to_ptr.hbm [resolvable:$true] %s3366_s3 }
 0xddf   : > { %s3368_s29 = scalar_lea.hbm %s3367_s3, 1  ;;  %p3373_p0 = scmp.lt.s32.totalorder %s3367_s3, %s4432_s4 }
 0xde0   : > { %p3369_p11 = scmp.ne.s32.totalorder %s3367_s3, %s3368_s29  ;;  %p3374_p1 = scmp.lt.s32.totalorder %s3372_s28, %s3368_s29 }
 0xde2   : > { %2797 = vmatpush.bf16.msrb.mxu1 %v3218_v33  ;;  %p3370_p12 = pnand %p3369_p11, %p3576_p5  ;;  %p3375_p2 = por %p3374_p1, %p3373_p0 }
 0xde4   : > { %p3371_p13 = pneg %p3370_p12 }
 0xde6   : > { %2798 = vmatpush.bf16.msrb.mxu1 %v3217_v35  ;;  %p3376_p3 = pnand %p3375_p2, %p3371_p13 }
 0xdea   : > { %2799 = vmatpush.bf16.msrb.mxu1 %v3216_v37 }
 0xdee   : > { %2800 = vmatpush.bf16.msrb.mxu1 %v3215_v39 }
 0xdf2   : > { %2801 = vmatpush.bf16.msrb.mxu1 %v3214_v40 }
 0xe35   : > { %v2588_v56 = vpop.permute.xlu2 %2587 }
 0xe4f   : > { %v2584_v43 = vpop.permute.xlu1 %2583  ;;  %v2580_v55 = vpop.permute.xlu0 %2579 }
 0xe50   : > { %v2590_v11 = vsel %vm1255_vm10, %v2571_v52, %v2580_v55  ;;  %v3297_v55 = vld [vmem:[%s4370_s16 + $0x1] ss:$0 sm:$0xff] }
 0xe51   : > { %v2591_v54 = vsel %vm1590_vm13, %v2590_v11, %v2584_v43 }
 0xe52   : > { %v2592_v57 = vsel %vm1592_vm14, %v2591_v54, %v2588_v56 }
 0xe53   : > { %v2593_v60 = vpack.c.bf16 %v2592_v57, %v2592_v57 }
 0xe55   : > { %3102 = vmatmul.msk.bf16.vlgmr.msrb.gmra.mxu3 %vm764_vm1, %v2593_v60 }
 0xed8   : > { %v2623_v59 = vpop.f32.mrf.mxu3 }
 0xed9   : > { %v2627_v63 = vadd.f32 %v2623_v59, %v3980_v27  ;;  %v3213_v27 = vld [vmem:[%s4367_s13 + $0x18] sm:$0xff] }
 0xeda   : > { %2700 = vmatpush.bf16.msra.mxu0 %v3213_v27 }
 0xedb   : > { %v4255_v0 = vadd.f32 %v3293_v61, %v2627_v63 }
 0xedd   : > { %v2638_v1 = vsel %vm764_vm1, %v4255_v0, 0.0 }
 0xede   : > { %2639 = vadd.xlane.f32.xlu0 %v2638_v1  ;;  %2701 = vmatpush.bf16.msra.mxu0 %v3212_v7 }
 0xee0   : > { %v2625_v2 = vpop.f32.mrf.mxu3 }
 0xf51   : > { %v2640_v3 = vpop.xlane.xlu0 %2639 }
 0xf52   : > { %v2641_v4 = vmul.f32 %v2640_v3, %v3631_v31  ;;  %v3223_v3 = vld [vmem:[%s4373_s19 + $0x8] sm:$0xff] }
 0xf53   : > { %2867 = vmatpush.bf16.msrb.mxu2 %v3223_v3 }
 0xf54   : > { %v2642_v19 = vsub.f32 %v4255_v0, %v2641_v4 }
 0xf56   : > { %v2643_v5 = vmul.f32 %v2642_v19, %v2642_v19 }
 0xf58   : > { %v2644_v6 = vsel %vm764_vm1, %v2643_v5, 0.0 }
 0xf59   : > { %2645 = vadd.xlane.f32.xlu1 %v2644_v6 }
 0xfcc   : > { %v2646_v8 = vpop.xlane.xlu1 %2645 }
 0xfcd   : > { %v2647_v9 = vmul.f32 %v2646_v8, %v3631_v31 }
 0xfcf   : > { %v2648_v10 = vadd.f32 1e-05, %v2647_v9 }
 0xfd1   : > { %3344 = vrsqrt.f32 %v2648_v10  ;;  %vm2655_vm10 = vweird.f32 %v2648_v10 }
 0xfd7   : > { %v3345_v12 = vpop.eup %3344 }
 0xfd8   : > { %v2650_v26 = vmul.f32 %v3345_v12, %v2648_v10  ;;  %vm2656_vm9 = vweird.f32 %v3345_v12 }
 0xfd9   : > { %vm2657_vm11 = vmor %vm2655_vm10, %vm2656_vm9 }
 0xfda   : > { %v2651_v13 = vmul.f32 %v3345_v12, %v2650_v26 }
 0xfdc   : > { %v2652_v15 = vmul.f32 0.5, %v2651_v13 }
 0xfde   : > { %v2653_v16 = vsub.f32 1.5, %v2652_v15 }
 0xfe0   : > { %v2654_v34 = vmul.f32 %v3345_v12, %v2653_v16 }
 0xfe2   : > { %v2658_v18 = vsel %vm2657_vm11, %v3345_v12, %v2654_v34  ;;  %v2814_v12 = vld [vmem:[%s4371_s17] sm:$0x1] }
 0xfe3   : > { %v2659_v21 = vmul.f32 %v2658_v18, %v2642_v19 }
 0xfe5   : > { %v2663_v14 = vmul.f32 %v3294_v17, %v2659_v21 }
 0xfe7   : > { %v2667_v24 = vadd.f32 %v3295_v22, %v2663_v14 }
 0xfe9   : > { %v2668_v25 = vpack.c.bf16 %v2667_v24, %v2667_v24 }
 0xfeb   : > { %3119 = vmatmul.msk.bf16.vlgmr.msra.gmra.mxu0 %vm764_vm1, %v2668_v25 }
0x1068   : > { %v2703_v30 = vpop.f32.mrf.mxu0 }
0x1069   : > { %v2704_v38 = vadd.f32 %v3296_v36, %v2703_v30 }
0x106b   : > { %v3120_v51 = vmul.f32 -1.702, %v2704_v38 }
0x106d   : > { %v2709_v58 = vmul.f32 1.442695, %v3120_v51 }
0x106f   : > { %3346 = vpow2.f32 %v2709_v58 }
0x1070   : > { %v2705_v41 = vpop.f32.mrf.mxu0 }
0x1075   : > { %v3347_v42 = vpop.eup %3346 }
0x1076   : > { %v2711_v62 = vadd.f32 1.0, %v3347_v42 }
0x1078   : > { %3348 = vrcp.f32 %v2711_v62  ;;  %v2723_v47 = vand.u32 2147483648, %v2711_v62  ;;  %v2721_v49 = vand.u32 2147483647, %v2711_v62  ;;  %vm2717_vm13 = vweird.f32 %v2711_v62 }
0x107a   : > { %v2724_v20 = vor.u32 1.1754944e-38, %v2723_v47  ;;  %vm2722_vm0 = vcmp.eq.f32.partialorder %v2721_v49, 8.507059e+37 }
0x107e   : > { %v3349_v44 = vpop.eup %3348 }
0x107f   : > { %v2713_v23 = vmul.f32 %v3349_v44, %v2711_v62  ;;  %vm2718_vm12 = vweird.f32 %v3349_v44 }
0x1080   : > { %vm2719_vm14 = vmor %vm2717_vm13, %vm2718_vm12 }
0x1081   : > { %v2714_v45 = vsub.f32 1.0, %v2713_v23 }
0x1083   : > { %v2715_v48 = vmul.f32 %v3349_v44, %v2714_v45 }
0x1085   : > { %v2716_v50 = vadd.f32 %v3349_v44, %v2715_v48 }
0x1087   : > { %v2720_v52 = vsel %vm2719_vm14, %v3349_v44, %v2716_v50 }
0x1088   : > { %v2725_v53 = vsel %vm2722_vm0, %v2724_v20, %v2720_v52 }
0x1089   : > { %v2727_v46 = vmul.f32 %v2725_v53, %v2704_v38 }
0x108b   : > { %v2728_v43 = vpack.c.bf16 %v2727_v46, %v2727_v46 }
0x108d   : > { %2802 = vmatmul.bf16.vlgmr.msrb.gmra.mxu1 %v2728_v43 }
0x110a   : > { %v2803_v11 = vpop.f32.mrf.mxu1 }
0x110b   : > { %v2807_v56 = vadd.f32 %v2803_v11, %v4255_v0  ;;  %v3222_v0 = vld [vmem:[%s4373_s19] sm:$0xff] }
0x110c   : > { %2868 = vmatpush.bf16.msrb.mxu2 %v3222_v0 }
0x110d   : > { %v2813_v54 = vadd.f32 %v3297_v55, %v2807_v56 }
0x110f   : > { %v2817_v57 = vsel %vm2816_vm2, %v2813_v54, 0.0 }
0x1110   : > { %2818 = vadd.xlane.f32.xlu2 %v2817_v57 }
0x1112   : > { %v2805_v60 = vpop.f32.mrf.mxu1 }
0x1183   : > { %v2819_v61 = vpop.xlane.xlu2 %2818 }
0x1184   : > { %v2820_v59 = vmul.f32 %v2819_v61, %v3631_v31 }
0x1186   : > { %v2821_v63 = vsub.f32 %v2813_v54, %v2820_v59 }
0x1188   : > { %v2822_v1 = vmul.f32 %v2821_v63, %v2821_v63 }
0x118a   : > { %v2823_v2 = vsel %vm2816_vm2, %v2822_v1, 0.0 }
0x118b   : > { %2824 = vadd.xlane.f32.xlu0 %v2823_v2 }
0x11fe   : > { %v2825_v4 = vpop.xlane.xlu0 %2824 }
0x11ff   : > { %v2826_v19 = vmul.f32 %v2825_v4, %v3631_v31  ;;  %v2815_v31 = vld [vmem:[%s4372_s18] sm:$0x1] }
0x1201   : > { %v2827_v5 = vadd.f32 1e-05, %v2826_v19 }
0x1203   : > { %3350 = vrsqrt.f32 %v2827_v5  ;;  %vm2834_vm4 = vweird.f32 %v2827_v5 }
0x1209   : > { %v3351_v6 = vpop.eup %3350 }
0x120a   : > { %v2829_v27 = vmul.f32 %v3351_v6, %v2827_v5  ;;  %vm2835_vm3 = vweird.f32 %v3351_v6 }
0x120b   : > { %vm2836_vm5 = vmor %vm2834_vm4, %vm2835_vm3 }
0x120c   : > { %v2830_v7 = vmul.f32 %v3351_v6, %v2829_v27 }
0x120e   : > { %v2831_v8 = vmul.f32 0.5, %v2830_v7 }
0x1210   : > { %v2832_v9 = vsub.f32 1.5, %v2831_v8 }
0x1212   : > { %v2833_v10 = vmul.f32 %v3351_v6, %v2832_v9 }
0x1214   : > { %v2837_v26 = vsel %vm2836_vm5, %v3351_v6, %v2833_v10 }
0x1215   : > { %v2838_v13 = vmul.f32 %v2837_v26, %v2821_v63 }
0x1217   : > { %v2839_v15 = vmul.f32 %v2838_v13, %v2814_v12 }
0x1219   : > { %v2840_v16 = vadd.f32 %v2839_v15, %v2815_v31 }
0x121b   : > { %v2841_v34 = vpack.c.bf16 %v2840_v16, %v2840_v16 }
0x121d   : > { %3178 = vmatmul.msk.bf16.vlgmr.msrb.gmra.mxu2 %vm764_vm1, %v2841_v34 }
0x12a0   : > { %v2870_v17 = vpop.f32.mrf.mxu2 }
0x12a1   : > { %2874 = vst [vmem:[%s621_s24] sm:$0x1] %v2870_v17 }
0x12a2   : > { %3379 = shalt.err (!%p3376_p3)
}
0x12a3   : > { %3224 = dma.vmem_to_hbm [thread:$0]  (%p3576_p5), %s2887_s23, 16, %s2889_s0, %s2876_s26  }
0x12a8   : > { %v2872_v18 = vpop.f32.mrf.mxu2 }
0x12a9 PF: > { %s4433_s25 = sld [smem:[#allocation7_spill]] }
0x12aa   : > { %s4434_s30 = sld [smem:[#allocation5_spill]] }
0x12af   : > { %p3230_p4 = scmp.ge.s32.totalorder %s4433_s25, 2 }
0x12b0   : > { %s2900_s6 = sand.u32 1, %s4434_s30  }
0x12b1   : > { %p3227_p7 = pnand %p3230_p4, %p3580_p6  ;;  %s2901_s5 = scalar_lea.sflag [#allocation3], %s2900_s6 }
0x12b3   : > { %p3228_p8 = pneg %p3227_p7 }
0x12b5   : > { %3397 = dma.done.wait (%p3228_p8), %s2901_s5, 16  }
0x12b6   : > { %3399 = vsyncadd (%p3228_p8), %s2901_s5, 4294967280  ;;  %s4436_s24 = sld [smem:[#allocation8_spill]]  ;;  %s4439_s1 = smov %s3406_s22 }
0x12b7   : > { %s4437_s3 = sld [smem:[#allocation6_spill]] }
0x12b8   : > { %s4438_s23 = sld [smem:[#allocation9_spill]] }
0x12bc   : > { %p30_p9 = scmp.ge.s32.totalorder %s4436_s24, 4  }
0x12bd   : > { %s4440_s22 = smov %s4437_s3 }
0x12be   :  { %32 = sbr.rel (!%p30_p9) target bundleno = 12 (0xc), region = 147 }
0x12c3   :  { %2906 = vsyncpa [#allocation3], 1 }
0x12c4   :  { %2908 = vsyncpa [#allocation3 + $0x1], 1 }

</bundles_post_ra>
